<compile_context>
chip_gen: v7x
topology: tpu7x:2x2x1
jax: 0.10.0
libtpu: 0.0.40
codegen_flags: <defaults>
</compile_context>

<pallas_src>
import jax
import jax.numpy as jnp
from jax.experimental import pallas as pl
from jax.experimental.pallas import tpu as pltpu


def _round_up(x, m):
    return ((x + m - 1) // m) * m


def frame_kernel(qid_ref, cid_ref, table_ref, m_ref, out_ref):
    # qid_ref  : VMEM (TB, 1)    int32  query ids for this batch tile
    # cid_ref  : VMEM (TB, Cp)   int32  candidate hypernym ids for this tile
    # table_ref: VMEM (Vtp, Dp)  bf16   padded embedding table (grid-invariant)
    # m_ref    : VMEM (Dp, Vtp)  bf16   M = W @ table^T        (grid-invariant)
    # out_ref  : VMEM (TB, Cp)   f32    per-candidate probabilities (lane-dense)
    tb, cp = cid_ref.shape
    vtp, dp = table_ref.shape
    cdt = table_ref.dtype

    # ---- query gather: one-hot @ table (tiny MXU matmul, exact row select) ---
    qids = qid_ref[...]                                        # (TB, 1) int32
    q_iota = jax.lax.broadcasted_iota(jnp.int32, (tb, vtp), 1)
    q_onehot = (qids == q_iota).astype(cdt)                    # (TB, Vtp) bf16
    q = jnp.dot(q_onehot, table_ref[...],
                preferred_element_type=jnp.float32)            # (TB, Dp) exact
    q = q.astype(cdt)                                          # (TB, Dp) bf16

    # ---- logits over the whole (padded) vocab: one dense MXU matmul ----------
    # logits_all[b, v] = query[b] @ W @ table[v]   (f32 accumulation)
    logits_all = jnp.dot(q, m_ref[...],
                         preferred_element_type=jnp.float32)   # (TB, Vtp) f32

    # ---- candidate column select: per-row one-hot mask + lane reduce ---------
    # Stays in f32 (no bf16 re-rounding of the logits).  O(TB*Cp*Vtp) VPU
    # compare/select + XLU reduce; cheap because the Dp factor of the old
    # candidate gather is gone.  (Large-vocab case needs the DMA-gather TODO.)
    cids = cid_ref[...]                                        # (TB, Cp) int32
    v_iota = jax.lax.broadcasted_iota(jnp.int32, (tb, cp, vtp), 2)
    mask = cids[:, :, None] == v_iota                          # (TB, Cp, Vtp)
    picked = jnp.where(
        mask, jnp.broadcast_to(logits_all[:, None, :], (tb, cp, vtp)), 0.0)
    scores = jnp.sum(picked, axis=-1)                          # (TB, Cp) f32

    # ---- sigmoid (EUP) + lane-dense store ------------------------------------
    out_ref[...] = jax.nn.sigmoid(scores)


def frame_forward(query_id, candidate_hyper_ids, emb_table, w, *, tb=128):
    """Pallas Frame.forward.

    query_id:            (B,)     int    query word ids
    candidate_hyper_ids: (B, C)   int    candidate hypernym ids per query
    emb_table:           (V+1, D) float  embedding table, last row = zero padding
    w:                   (D, D)   float  bilinear weight of the inner module
    Returns (B, C) float32 probabilities sigmoid(q @ W @ h).

    tb = batch rows per grid step (multiple of 8); defaults to 128 to fill the
    MXU rows and is clamped so the batch grid has at least 2 steps whenever B
    allows it (both v7x TensorCores get work).  Ids must be < V+1: out-of-range
    ids silently select a zero embedding (prob 0.5) instead of erroring like
    torch.nn.Embedding.
    """
    B, C = candidate_hyper_ids.shape
    Vt, D = emb_table.shape
    padding_idx = Vt - 1
    cdt = jnp.bfloat16                      # matmul-input dtype (f32 accumulation)

    # Lane-dense padding: vocab (lane axis of logits & M), embedding dim, and
    # candidate axis (output lane axis -> unmasked full-width stores).
    Vtp = _round_up(max(Vt, 128), 128)
    Dp = _round_up(max(D, 128), 128)
    Cp = _round_up(max(C, 128), 128)

    # Batch tile: multiple of 8 sublanes; keep >= 2 grid steps when possible.
    tb = max(8, min(_round_up(tb, 8), _round_up(pl.cdiv(B, 2), 8)))
    Bp = _round_up(B, tb)

    # Padded bf16 table; rows >= Vt stay zero so padded/pad ids score 0
    # (prob 0.5, sliced off below).
    table_p = jnp.zeros((Vtp, Dp), cdt).at[:Vt, :D].set(emb_table.astype(cdt))

    # Weight-only precompute (plain XLA, once): M = W @ table^T.  The kernel
    # then scores every vocab entry with a single dense (TB, Dp) @ (Dp, Vtp)
    # matmul instead of a per-candidate one-hot gather.
    m = w.astype(jnp.float32) @ emb_table.astype(jnp.float32).T      # (D, Vt)
    m_p = jnp.zeros((Dp, Vtp), cdt).at[:D, :Vt].set(m.astype(cdt))

    qid_p = jnp.full((Bp, 1), padding_idx, jnp.int32).at[:B, 0].set(
        query_id.astype(jnp.int32))
    cid_p = jnp.full((Bp, Cp), padding_idx, jnp.int32).at[:B, :C].set(
        candidate_hyper_ids.astype(jnp.int32))

    # VMEM budget derived from the actual buffers (x2 slack), clamped to fit
    # v7x's 64 MiB physical VMEM; v5e/v6e (128 MiB) have extra headroom.
    resident = 2 * (Vtp * Dp * 2)                     # table + M (bf16, DMA'd once)
    io_blocks = 2 * (tb * 4 + 2 * tb * Cp * 4)        # double-buffered id/out blocks
    interm = tb * Cp * Vtp * 9 + tb * Vtp * 12 + tb * Dp * 6
    vmem_limit = int(min(max(2 * (resident + io_blocks + interm), 32 << 20),
                         56 << 20))

    grid = (Bp // tb,)
    out = pl.pallas_call(
        frame_kernel,
        out_shape=jax.ShapeDtypeStruct((Bp, Cp), jnp.float32),
        grid=grid,
        in_specs=[
            # TODO(synk): query ids could live in SMEM via scalar prefetch; kept
            # as a (tb, 1) VMEM block for simplicity (minor).
            pl.BlockSpec((tb, 1), lambda b: (b, 0)),        # query ids
            pl.BlockSpec((tb, Cp), lambda b: (b, 0)),       # candidate ids
            # Grid-invariant blocks: the block index never changes, so they are
            # DMA'd into VMEM once and reused across all grid steps.  For
            # production-size vocabularies switch to the HBM + DMA row-gather
            # structure (see TODO at the top) rather than a VMEM-resident table.
            pl.BlockSpec((Vtp, Dp), lambda b: (0, 0)),      # embedding table
            pl.BlockSpec((Dp, Vtp), lambda b: (0, 0)),      # M = W @ table^T
        ],
        out_specs=pl.BlockSpec((tb, Cp), lambda b: (b, 0)),
        compiler_params=pltpu.CompilerParams(
            # No cross-step carry: batch steps shard across v7x's 2 TensorCores.
            dimension_semantics=("parallel",),
            vmem_limit_bytes=vmem_limit,
        ),
    )(qid_p, cid_p, table_p, m_p)

    # Padded rows/columns hold sigmoid(0) = 0.5; slice before any downstream use
    # (e.g. a BCELoss reduction must never see the padded region).
    return out[:B, :C]


def frame_forward_ref(query_id, candidate_hyper_ids, emb_table, w):
    q_vec = emb_table[query_id]                 # (B, D)
    h_vec = emb_table[candidate_hyper_ids]      # (B, C, D)
    logits = jnp.einsum("bd,de,bce->bc", q_vec, w, h_vec)
    return jax.nn.sigmoid(logits)


if __name__ == "__main__":
    # Small deterministic synthetic setup.
    V, D = 50, 32          # vocab size, embedding dim
    B, C = 12, 100         # batch, number of candidate hypernyms
    padding_idx = V        # last table row is the zero padding embedding

    key = jax.random.PRNGKey(0)
    k_emb, k_w, k_q, k_c = jax.random.split(key, 4)

    # Embedding table (V+1, D), padding row = zeros (as in from_pretrained_embedding).
    emb_table = jax.random.normal(k_emb, (V + 1, D), dtype=jnp.float32) * 0.1
    emb_table = emb_table.at[padding_idx].set(0.0)

    # Deterministic inner-module bilinear weight.
    w = jax.random.normal(k_w, (D, D), dtype=jnp.float32) * 0.1

    # Inputs (candidates may include the padding idx, as in the reference model).
    query_id = jax.random.randint(k_q, (B,), 0, V, dtype=jnp.int32)
    candidate_hyper_ids = jax.random.randint(
        k_c, (B, C), 0, V + 1, dtype=jnp.int32)

    out = frame_forward(query_id, candidate_hyper_ids, emb_table, w)
    out = jax.block_until_ready(out)

    ref = frame_forward_ref(query_id, candidate_hyper_ids, emb_table, w)

    assert out.shape == (B, C)
    assert jnp.allclose(out, ref, atol=5e-3), float(jnp.max(jnp.abs(out - ref)))

    print("KERNEL_OK")
</pallas_src>

<mosaic_0001>
module attributes {stable_mosaic.version = 11 : i64} {
  func.func @frame_kernel(%arg0: i32, %arg1: memref<8x1xi32, #tpu.memory_space<vmem>>, %arg2: memref<8x128xi32, #tpu.memory_space<vmem>>, %arg3: memref<128x128xbf16, #tpu.memory_space<vmem>>, %arg4: memref<128x128xbf16, #tpu.memory_space<vmem>>, %arg5: memref<8x128xf32, #tpu.memory_space<vmem>>) attributes {dimension_semantics = [#tpu.dimension_semantics<parallel>], iteration_bounds = array<i64: 2>, scalar_prefetch = 0 : i64, scratch_operands = 0 : i64, tpu.core_type = #tpu.core_type<tc>, window_params = [{transform_indices = @transform_0, window_bounds = array<i64: 8, 1>}, {transform_indices = @transform_1, window_bounds = array<i64: 8, 128>}, {pipeline_mode = #tpu.pipeline_mode<synchronous>, transform_indices = @transform_2, window_bounds = array<i64: 128, 128>}, {pipeline_mode = #tpu.pipeline_mode<synchronous>, transform_indices = @transform_3, window_bounds = array<i64: 128, 128>}, {transform_indices = @transform_4, window_bounds = array<i64: 8, 128>}]} {
    %c0 = arith.constant 0 : index
    %c0_0 = arith.constant 0 : index
    %0 = vector.load %arg1[%c0, %c0_0] : memref<8x1xi32, #tpu.memory_space<vmem>>, vector<8x1xi32>
    %1 = tpu.iota {dimensions = array<i32: 1>} : vector<8x128xi32>
    %2 = vector.broadcast %0 : vector<8x1xi32> to vector<8x128xi32>
    %3 = arith.cmpi eq, %2, %1 : vector<8x128xi32>
    %4 = arith.extui %3 : vector<8x128xi1> to vector<8x128xi32>
    %5 = arith.sitofp %4 : vector<8x128xi32> to vector<8x128xf32>
    %6 = arith.truncf %5 : vector<8x128xf32> to vector<8x128xbf16>
    %c0_1 = arith.constant 0 : index
    %c0_2 = arith.constant 0 : index
    %7 = vector.load %arg3[%c0_1, %c0_2] : memref<128x128xbf16, #tpu.memory_space<vmem>>, vector<128x128xbf16>
    %cst = arith.constant dense<0.000000e+00> : vector<8x128xf32>
    %8 = tpu.matmul %6, %7, %cst {dimension_numbers = #tpu.dot_dimension_numbers<[1], [0], [0], [1], [0, 0, 1, 1], [], []>} : vector<8x128xbf16>, vector<128x128xbf16>, vector<8x128xf32> -> vector<8x128xf32>
    %9 = arith.truncf %8 : vector<8x128xf32> to vector<8x128xbf16>
    %c0_3 = arith.constant 0 : index
    %c0_4 = arith.constant 0 : index
    %10 = vector.load %arg4[%c0_3, %c0_4] : memref<128x128xbf16, #tpu.memory_space<vmem>>, vector<128x128xbf16>
    %cst_5 = arith.constant dense<0.000000e+00> : vector<8x128xf32>
    %11 = tpu.matmul %9, %10, %cst_5 {dimension_numbers = #tpu.dot_dimension_numbers<[1], [0], [0], [1], [0, 0, 1, 1], [], []>} : vector<8x128xbf16>, vector<128x128xbf16>, vector<8x128xf32> -> vector<8x128xf32>
    %c0_6 = arith.constant 0 : index
    %c0_7 = arith.constant 0 : index
    %12 = vector.load %arg2[%c0_6, %c0_7] : memref<8x128xi32, #tpu.memory_space<vmem>>, vector<8x128xi32>
    %13 = tpu.iota {dimensions = array<i32: 2>} : vector<8x128x128xi32>
    %14 = vector.shape_cast %12 : vector<8x128xi32> to vector<8x128x1xi32>
    %15 = vector.broadcast %14 : vector<8x128x1xi32> to vector<8x128x128xi32>
    %16 = arith.cmpi eq, %15, %13 : vector<8x128x128xi32>
    %17 = vector.shape_cast %11 : vector<8x128xf32> to vector<8x1x128xf32>
    %18 = vector.shape_cast %17 : vector<8x1x128xf32> to vector<8x1x128xf32>
    %19 = vector.broadcast %18 : vector<8x1x128xf32> to vector<8x128x128xf32>
    %cst_8 = arith.constant 0.000000e+00 : f32
    %20 = vector.broadcast %cst_8 : f32 to vector<8x128x128xf32>
    %21 = arith.select %16, %19, %20 : vector<8x128x128xi1>, vector<8x128x128xf32>
    %cst_9 = arith.constant dense<0.000000e+00> : vector<8x128xf32>
    %22 = vector.multi_reduction <add>, %21, %cst_9 [2] : vector<8x128x128xf32> to vector<8x128xf32>
    %23 = arith.negf %22 : vector<8x128xf32>
    %24 = math.exp %23 : vector<8x128xf32>
    %cst_10 = arith.constant 1.000000e+00 : f32
    %25 = vector.broadcast %cst_10 : f32 to vector<8x128xf32>
    %26 = arith.addf %25, %24 : vector<8x128xf32>
    %27 = arith.divf %25, %26 : vector<8x128xf32>
    %c0_11 = arith.constant 0 : index
    %c0_12 = arith.constant 0 : index
    %28 = vector.load %arg5[%c0_11, %c0_12] : memref<8x128xf32, #tpu.memory_space<vmem>>, vector<8x128xf32>
    tpu.vector_store %arg5[%c0_11, %c0_12], %27 {strides = array<i32>} : memref<8x128xf32, #tpu.memory_space<vmem>>, vector<8x128xf32>,
    return
  }
  func.func @transform_0(%arg0: i32) -> (i32, i32) {
    %c0_i32 = arith.constant 0 : i32
    %c0_i32_0 = arith.constant 0 : i32
    return %arg0, %c0_i32 : i32, i32
  }
  func.func @transform_1(%arg0: i32) -> (i32, i32) {
    %c0_i32 = arith.constant 0 : i32
    %c0_i32_0 = arith.constant 0 : i32
    return %arg0, %c0_i32 : i32, i32
  }
  func.func @transform_2(%arg0: i32) -> (i32, i32) {
    %c0_i32 = arith.constant 0 : i32
    %c0_i32_0 = arith.constant 0 : i32
    %c0_i32_1 = arith.constant 0 : i32
    return %c0_i32, %c0_i32_0 : i32, i32
  }
  func.func @transform_3(%arg0: i32) -> (i32, i32) {
    %c0_i32 = arith.constant 0 : i32
    %c0_i32_0 = arith.constant 0 : i32
    %c0_i32_1 = arith.constant 0 : i32
    return %c0_i32, %c0_i32_0 : i32, i32
  }
  func.func @transform_4(%arg0: i32) -> (i32, i32) {
    %c0_i32 = arith.constant 0 : i32
    %c0_i32_0 = arith.constant 0 : i32
    return %arg0, %c0_i32 : i32, i32
  }
}

</mosaic_0001>

<bundles_post_ra>
// kernel: tpu_custom_call.1
= control target key start
LH: loop header
LB: loop body
LE: loop exit
PB: predicated region body
PF: predicated region fallthrough
CT: control target
= control target key end

     0   :  { %9 = vsyncpa [#allocation3], 0  ;;  %s5907_s0 = inlined_call_operand.vmem [shape: s32[16,1], index: 0, kind: input, shape index: {}]   ;;  %s5908_s1 = inlined_call_operand.vmem [shape: s32[16,128], index: 1, kind: input, shape index: {}]   ;;  %s5909_s2 = inlined_call_operand.hbm [shape: bf16[128,128], index: 2, kind: input, shape index: {}]   ;;  %s5910_s3 = inlined_call_operand.hbm [shape: bf16[128,128], index: 3, kind: input, shape index: {}]   ;;  %s5911_s4 = inlined_call_operand.hbm [shape: f32[16,128], index: 4, kind: output, shape index: {}]  }
   0x1   :  { %10 = vsyncpa [#allocation6], 0 }
   0x2   :  { %11 = vsyncpa [#allocation4], 0 }
   0x3   :  { %13 = vsyncpa [#allocation4 + $0x1], 0  ;;  %s4259_s15 = smov 0   ;;  %s4261_s16 = smov 0  }
   0x4   :  { %s4263_s17 = smov 0   ;;  %s4265_s18 = smov 0  }
   0x5 LB: > { %s4280_s19 = sadd.s32 4294967295, %s4222_s18   ;;  %s3280_s20 = sadd.s32 4294967294, %s4222_s18   ;;  %s4222_s18 = sphi %s4265_s18, %s6076_s18   ;;  %s4218_s17 = sphi %s4263_s17, %s6075_s17   ;;  %s4214_s16 = sphi %s4261_s16, %s6074_s16   ;;  %s4210_s15 = sphi %s4259_s15, %s6073_s15  }
   0x6   : > { %s4284_s21 = sadd.s32 1, %s4222_s18   ;;  %s120_s22 = sadd.s32 1, %s4218_s17 }
   0x7   : > { %s117_s23 = ssub.s32 %s4222_s18, %s4284_s21  ;;  %p130_p0 = scmp.ne.s32.totalorder %s4218_s17, %s4214_s16 }
   0x8   : > { %p118_p1 = scmp.eq.s32.totalorder %s117_s23, 0  ;;  %p131_p2 = scmp.eq.s32.totalorder %s4280_s19, 1 }
   0x9   : > { %p136_p3 = scmp.ne.s32.totalorder %s4214_s16, %s4210_s15  ;;  %p137_p4 = scmp.eq.s32.totalorder %s3280_s20, 1 }
   0xa   : > { %s4295_s24 = scalar_select %p118_p1, %s4218_s17, %s120_s22  }
   0xb   : > { %p4297_p5 = por %p131_p2, %p130_p0  ;;  %p4301_p6 = por %p137_p4, %p136_p3 }
   0xc   : > { %p3281_p7 = scmp.ge.s32.totalorder %s4222_s18, 1  ;;  %p144_p8 = scmp.lt.s32.totalorder %s4222_s18, 3 }
   0xd   : > { %s5938_s25 = scalar_select %p4297_p5, 1, 0 }
   0xe   : > { %s5939_s26 = scalar_select %p4301_p6, 1, 0 }
   0xf   : > { %p5912_p9 = scmp.eq.s32.totalorder %s4280_s19, 0  ;;  %p4308_p10 = pnand %p3281_p7, %p144_p8 }
  0x10   : > { %s4224_s28 = smov [#allocation2]   ;;  %s4225_s5 = smov [#allocation5]  }
  0x11   : > { %s5940_s27 = scalar_select %p4308_p10, 1, 0 }
  0x12   : > { %s156_s29 = sshll.u32 %s4224_s28, 4  ;;  %p3510_p11 = pneg %p4308_p10  ;;  %s157_s29 = int_to_ptr.vmem [resolvable:$true] %s156_s29 }
  0x13   : > { %s169_s6 = sshll.u32 %s4225_s5, 4  ;;  %s4096_s9 = scalar_lea.hbm %s5909_s2, 1024  ;;  %s4320_s6 = int_to_ptr.vmem [resolvable:$true] %s169_s6 }
  0x14   : > { %p4316_p12 = pnand %p5912_p9, %p3510_p11  ;;  %p4097_p13 = scmp.ne.s32.totalorder %s5909_s2, %s4096_s9 }
  0x15   : > { %p4103_p3 = scmp.lt.u32.totalorder %s4096_s9, %s5909_s2 }
  0x16   : > { %p4098_p0 = pneg %p4316_p12 }
  0x18   : > { %p4099_p1 = pnand %p4098_p0, %p4097_p13 }
  0x1a   : > { %p4100_p2 = pneg %p4099_p1 }
  0x1c   : > { %p4105_p4 = pnand %p4103_p3, %p4100_p2 }
  0x1e   : > { %4108 = shalt.err (!%p4105_p4)
}
  0x1f   : > { %s4109_s14 = scalar_lea.vmem %s157_s29, 1024  ;;  %p4117_p9 = scmp.lt.s32.totalorder %s157_s29, %s157_s29 }
  0x20   : > { %p4110_p7 = scmp.ne.s32.totalorder %s157_s29, %s4109_s14  ;;  %p4118_p6 = scmp.lt.s32.totalorder %s4109_s14, %s4109_s14 }
  0x22   : > { %p4112_p8 = pnand %p4110_p7, %p4098_p0  ;;  %p4119_p5 = por %p4118_p6, %p4117_p9 }
  0x24   : > { %p4113_p11 = pneg %p4112_p8 }
  0x26   : > { %p4120_p10 = pnand %p4119_p5, %p4113_p11 }
  0x28   : > { %4123 = shalt.err (!%p4120_p10)
}
  0x29   : > { %s4226_s20 = smov 64   ;;  %s4227_s22 = smov 4  }
  0x2a   : > { %3513 = dma.hbm_to_vmem [thread:$0]  (!%p4316_p12), %s5909_s2, 1024, %s157_s29, [#allocation3], %s4226_s20, %s4226_s20, %s4227_s22  }
  0x2b   : > { %s4124_s8 = scalar_lea.hbm %s5910_s3, 1024 }
  0x2c   : > { %p4125_p13 = scmp.ne.s32.totalorder %s5910_s3, %s4124_s8  ;;  %p4131_p9 = scmp.lt.u32.totalorder %s4124_s8, %s5910_s3 }
  0x2e   : > { %p4127_p5 = pnand %p4125_p13, %p4098_p0 }
  0x30   : > { %p4128_p6 = pneg %p4127_p5 }
  0x32   : > { %p4133_p10 = pnand %p4131_p9, %p4128_p6 }
  0x34   : > { %4136 = shalt.err (!%p4133_p10)
}
  0x35   : > { %s4137_s29 = scalar_lea.vmem %s4320_s6, 1024  ;;  %p4145_p4 = scmp.lt.s32.totalorder %s4320_s6, %s4320_s6 }
  0x36   : > { %p4138_p1 = scmp.ne.s32.totalorder %s4320_s6, %s4137_s29  ;;  %p4146_p7 = scmp.lt.s32.totalorder %s4137_s29, %s4137_s29 }
  0x38   : > { %p4140_p2 = pnand %p4138_p1, %p4098_p0  ;;  %p4147_p8 = por %p4146_p7, %p4145_p4 }
  0x3a   : > { %p4141_p3 = pneg %p4140_p2 }
  0x3c   : > { %p4148_p11 = pnand %p4147_p8, %p4141_p3 }
  0x3e   : > { %4151 = shalt.err (!%p4148_p11)
}
  0x3f   : > { %3516 = dma.hbm_to_vmem [thread:$0]  (!%p4316_p12), %s5910_s3, 1024, %s4320_s6, [#allocation6], %s4226_s20, %s4226_s20, %s4227_s22  }
  0x40   : > { %p5942_p13 = scmp.ne.s32.totalorder %s5940_s27, 0 }
  0x42   : > { %199 = sbr.rel (%p5942_p13) target bundleno = 1092 (0x444), region = 36 }
  0x49   : > { %p5943_p5 = scmp.eq.s32.totalorder %s4280_s19, 0 }
  0x4b   : > { %4197 = dma.done.wait (%p5943_p5), [#allocation3], 1024   ;;  %p5944_p0 = pmov %p5943_p5 }
  0x4d   : > { %4199 = vsyncadd (%p5944_p0), [#allocation3], 4294966272  ;;  %p5945_p6 = pmov %p5944_p0 }
  0x4e   : > { %p5946_p9 = pmov %p5944_p0 }
  0x4f   : > { %4201 = dma.done.wait (%p5945_p6), [#allocation6], 1024  }
  0x50   : > { %4203 = vsyncadd (%p5946_p9), [#allocation6], 4294966272  ;;  %p232_p10 = scmp.lt.s32.totalorder %s4280_s19, 1  ;;  %v242_v0 = vlaneseq  ;;  %v4228_v1 = vmov 0   ;;  %v4229_v2 = vmov 0.0   ;;  %v3568_v8 = vld [vmem:[#allocation2] sm:$0xff]  }
  0x51   : > { %3567 = vset.pattern.permute.xlu0 %v4228_v1  ;;  %3460 = vmatprep.subr.bf16.mxu0 %v4229_v2  ;;  %v3569_v9 = vld [vmem:[#allocation2 + $0x8] sm:$0xff]   ;;  %vm4230_vm0 = vmmov 0   ;;  %v3570_v10 = vld [vmem:[#allocation2 + $0x10] sm:$0xff]   ;;  %v3576_v11 = vld [vmem:[#allocation5] sm:$0xff]   ;;  %v4231_v33 = vmov 1.0|1.0  }
  0x52   : > { %s233_s27 = scalar_select %p232_p10, %s4280_s19, 1  ;;  %v4383_v3 = vshrl.u32 %v242_v0, 7  ;;  %3480 = vmatprep.subr.bf16.mxu1 %v4229_v2  ;;  %3461 = vmatpush3.bf16.msra.mxu0 %v3568_v8  ;;  %v3571_v12 = vld [vmem:[#allocation2 + $0x18] sm:$0xff]   ;;  %v3577_v13 = vld [vmem:[#allocation5 + $0x8] sm:$0xff]   ;;  %v3578_v14 = vld [vmem:[#allocation5 + $0x10] sm:$0xff]   ;;  %v4441_v30 = vand.u32 127, %v242_v0 }
  0x53   : > { %3462 = vmatprep.subr.bf16.mxu0 %v4229_v2  ;;  %3476 = vmatprep.mubr.msk.bf16.mxu0 %vm4230_vm0, %v4229_v2  ;;  %v3572_v15 = vld [vmem:[#allocation2 + $0x20] sm:$0xff]   ;;  %v3579_v16 = vld [vmem:[#allocation5 + $0x18] sm:$0xff]   ;;  %v3573_v17 = vld [vmem:[#allocation2 + $0x28] sm:$0xff]   ;;  %s229_s7 = sand.u32 1, %s4214_s16   ;;  %s3439_s9 = sshll.u32 %s4280_s19, 7 }
  0x54   : > { %s3289_s30 = sshll.u32 %s233_s27, 3  ;;  %v4387_v4 = vsub.s32 0, %v4383_v3  ;;  %3496 = vmatprep.mubr.msk.bf16.mxu1 %vm4230_vm0, %v4229_v2  ;;  %3481 = vmatpush3.bf16.msra.mxu1 %v3576_v11  ;;  %v3580_v18 = vld [vmem:[#allocation5 + $0x20] sm:$0xff]   ;;  %v3574_v19 = vld [vmem:[#allocation2 + $0x30] sm:$0xff]   ;;  %v3581_v20 = vld [vmem:[#allocation5 + $0x28] sm:$0xff]   ;;  %v530_v22 = vsub.s32 1, %v4383_v3  ;;  %s5863_s13 = scalar_lea.hbm %s5911_s4, %s3439_s9 }
  0x55   : > { %s235_s22 = scalar_lea.vmem %s5907_s0, %s3289_s30  ;;  %s239_s5 = scalar_lea.vmem %s5908_s1, %s3289_s30  ;;  %3482 = vmatprep.subr.bf16.mxu1 %v4229_v2  ;;  %v3575_v21 = vld [vmem:[#allocation2 + $0x38] sm:$0xff]   ;;  %v3582_v23 = vld [vmem:[#allocation5 + $0x30] sm:$0xff]   ;;  %v597_v25 = vsub.s32 2, %v4383_v3  ;;  %v664_v27 = vsub.s32 3, %v4383_v3  ;;  %v731_v29 = vsub.s32 4, %v4383_v3  ;;  %v798_v34 = vsub.s32 5, %v4383_v3 }
  0x56   : > { %v241_v5 = vld [vmem:[%s235_s22] sm:$0xff]  ;;  %3463 = vmatpush3.bf16.msra.mxu0 %v3569_v9  ;;  %v865_v42 = vsub.s32 6, %v4383_v3  ;;  %v3583_v52 = vld [vmem:[#allocation5 + $0x38] sm:$0xff]   ;;  %v932_v55 = vsub.s32 7, %v4383_v3  ;;  %s5837_s8 = sshll.u32 %s229_s7, 3  ;;  %s3174_s19 = scalar_lea.sflag [#allocation4], %s229_s7 }
  0x57   : > { %v4395_v6 = vld [vmem:[%s239_s5] sm:$0xff]  ;;  %245 = vperm.xlu0 %3567, %v241_v5   ;;  %3464 = vmatprep.subr.bf16.mxu0 %v4229_v2  ;;  %s231_s10 = scalar_lea.vmem [#allocation7], %s5837_s8  ;;  %p6071_p1 = scmp.ne.s32.totalorder %s5938_s25, 0 }
  0x58   : > { %v4399_v7 = vrot.slane %v4395_v6, %v4387_v4  ;;  %3483 = vmatpush3.bf16.msra.mxu1 %v3577_v13  ;;  %v531_v24 = vrot.slane %v4395_v6, %v530_v22  ;;  %v598_v26 = vrot.slane %v4395_v6, %v597_v25  ;;  %v665_v28 = vrot.slane %v4395_v6, %v664_v27  ;;  %s3187_s11 = sshll.u32 %s231_s10, 4  ;;  %s4233_s27 = smov [#allocation7]   ;;  %s5865_s11 = int_to_ptr.vmem [resolvable:$true] %s3187_s11 }
  0x59   : > { %3484 = vmatprep.subr.bf16.mxu1 %v4229_v2  ;;  %v732_v32 = vrot.slane %v4395_v6, %v731_v29  ;;  %v799_v35 = vrot.slane %v4395_v6, %v798_v34  ;;  %v866_v45 = vrot.slane %v4395_v6, %v865_v42  ;;  %v933_v58 = vrot.slane %v4395_v6, %v932_v55  ;;  %s4152_s14 = scalar_lea.vmem %s5865_s11, 128  ;;  %s4156_s30 = sshll.u32 %s4233_s27, 4  ;;  %s4157_s30 = int_to_ptr.vmem [resolvable:$false] %s4156_s30 }
  0x5a   : > { %470 = vbcast.lane.b32.xlu1 %v4399_v7, 264  ;;  %3465 = vmatpush3.bf16.msra.mxu0 %v3570_v10  ;;  %p4153_p12 = scmp.ne.s32.totalorder %s5865_s11, %s4152_s14  ;;  %s4158_s6 = scalar_lea.vmem %s4157_s30, 256 }
  0x5b   : > { %466 = vbcast.lane.b32.xlu0 %v4399_v7, 256  ;;  %3466 = vmatprep.subr.bf16.mxu0 %v4229_v2  ;;  %p4159_p4 = scmp.lt.s32.totalorder %s5865_s11, %s4157_s30  ;;  %p4160_p7 = scmp.lt.s32.totalorder %s4158_s6, %s4152_s14 }
  0x5c   : > { %3485 = vmatpush3.bf16.msra.mxu1 %v3578_v14  ;;  %p4154_p2 = pnand %p4153_p12, %p6071_p1 }
  0x5d   : > { %3486 = vmatprep.subr.bf16.mxu1 %v4229_v2  ;;  %p4161_p8 = por %p4160_p7, %p4159_p4 }
  0x5e   : > { %474 = vbcast.lane.b32.xlu1 %v4399_v7, 272  ;;  %3467 = vmatpush3.bf16.msra.mxu0 %v3571_v12  ;;  %p4155_p3 = pneg %p4154_p2 }
  0x5f   : > { %478 = vbcast.lane.b32.xlu0 %v4399_v7, 280  ;;  %3468 = vmatprep.subr.bf16.mxu0 %v4229_v2 }
  0x60   : > { %3487 = vmatpush3.bf16.msra.mxu1 %v3579_v16  ;;  %p4162_p11 = pnand %p4161_p8, %p4155_p3 }
  0x61   : > { %3488 = vmatprep.subr.bf16.mxu1 %v4229_v2 }
  0x62   : > { %482 = vbcast.lane.b32.xlu1 %v4399_v7, 288  ;;  %3469 = vmatpush3.bf16.msra.mxu0 %v3572_v15 }
  0x63   : > { %486 = vbcast.lane.b32.xlu0 %v4399_v7, 296  ;;  %3470 = vmatprep.subr.bf16.mxu0 %v4229_v2 }
  0x64   : > { %3489 = vmatpush3.bf16.msra.mxu1 %v3580_v18 }
  0x65   : > { %3490 = vmatprep.subr.bf16.mxu1 %v4229_v2 }
  0x66   : > { %490 = vbcast.lane.b32.xlu1 %v4399_v7, 304  ;;  %3471 = vmatpush3.bf16.msra.mxu0 %v3573_v17 }
  0x67   : > { %494 = vbcast.lane.b32.xlu0 %v4399_v7, 312  ;;  %3472 = vmatprep.subr.bf16.mxu0 %v4229_v2 }
  0x68   : > { %3491 = vmatpush3.bf16.msra.mxu1 %v3581_v20 }
  0x69   : > { %3492 = vmatprep.subr.bf16.mxu1 %v4229_v2 }
  0x6a   : > { %498 = vbcast.lane.b32.xlu1 %v4399_v7, 320  ;;  %3473 = vmatpush3.bf16.msra.mxu0 %v3574_v19 }
  0x6b   : > { %502 = vbcast.lane.b32.xlu0 %v4399_v7, 328  ;;  %3474 = vmatprep.subr.bf16.mxu0 %v4229_v2 }
  0x6c   : > { %3493 = vmatpush3.bf16.msra.mxu1 %v3582_v23 }
  0x6d   : > { %3494 = vmatprep.subr.bf16.mxu1 %v4229_v2 }
  0x6e   : > { %506 = vbcast.lane.b32.xlu1 %v4399_v7, 336  ;;  %3475 = vmatpush3.bf16.msra.mxu0 %v3575_v21 }
  0x6f   : > { %510 = vbcast.lane.b32.xlu0 %v4399_v7, 344 }
  0x70   : > { %3495 = vmatpush3.bf16.msra.mxu1 %v3583_v52 }
  0x72   : > { %514 = vbcast.lane.b32.xlu1 %v4399_v7, 352 }
  0x73   : > { %518 = vbcast.lane.b32.xlu0 %v4399_v7, 360 }
  0x76   : > { %522 = vbcast.lane.b32.xlu1 %v4399_v7, 368 }
  0x77   : > { %526 = vbcast.lane.b32.xlu0 %v4399_v7, 376 }
  0x7a   : > { %533 = vbcast.lane.b32.xlu1 %v531_v24, 256 }
  0x7b   : > { %537 = vbcast.lane.b32.xlu0 %v531_v24, 264 }
  0x7e   : > { %541 = vbcast.lane.b32.xlu1 %v531_v24, 272 }
  0x7f   : > { %545 = vbcast.lane.b32.xlu0 %v531_v24, 280 }
  0x82   : > { %549 = vbcast.lane.b32.xlu1 %v531_v24, 288 }
  0x83   : > { %553 = vbcast.lane.b32.xlu0 %v531_v24, 296 }
  0x86   : > { %557 = vbcast.lane.b32.xlu1 %v531_v24, 304 }
  0x87   : > { %561 = vbcast.lane.b32.xlu0 %v531_v24, 312 }
  0x8a   : > { %565 = vbcast.lane.b32.xlu1 %v531_v24, 320 }
  0x8b   : > { %569 = vbcast.lane.b32.xlu0 %v531_v24, 328 }
  0x8e   : > { %573 = vbcast.lane.b32.xlu1 %v531_v24, 336 }
  0x8f   : > { %577 = vbcast.lane.b32.xlu0 %v531_v24, 344 }
  0x92   : > { %581 = vbcast.lane.b32.xlu1 %v531_v24, 352 }
  0x93   : > { %585 = vbcast.lane.b32.xlu0 %v531_v24, 360 }
  0x96   : > { %589 = vbcast.lane.b32.xlu1 %v531_v24, 368 }
  0x97   : > { %593 = vbcast.lane.b32.xlu0 %v531_v24, 376 }
  0x9a   : > { %600 = vbcast.lane.b32.xlu1 %v598_v26, 256 }
  0x9b   : > { %604 = vbcast.lane.b32.xlu0 %v598_v26, 264 }
  0x9e   : > { %608 = vbcast.lane.b32.xlu1 %v598_v26, 272 }
  0x9f   : > { %612 = vbcast.lane.b32.xlu0 %v598_v26, 280 }
  0xa2   : > { %616 = vbcast.lane.b32.xlu1 %v598_v26, 288 }
  0xa3   : > { %620 = vbcast.lane.b32.xlu0 %v598_v26, 296 }
  0xa6   : > { %624 = vbcast.lane.b32.xlu1 %v598_v26, 304 }
  0xa7   : > { %628 = vbcast.lane.b32.xlu0 %v598_v26, 312 }
  0xaa   : > { %632 = vbcast.lane.b32.xlu1 %v598_v26, 320 }
  0xab   : > { %636 = vbcast.lane.b32.xlu0 %v598_v26, 328 }
  0xae   : > { %640 = vbcast.lane.b32.xlu1 %v598_v26, 336 }
  0xaf   : > { %644 = vbcast.lane.b32.xlu0 %v598_v26, 344 }
  0xb2   : > { %648 = vbcast.lane.b32.xlu1 %v598_v26, 352 }
  0xb3   : > { %652 = vbcast.lane.b32.xlu0 %v598_v26, 360 }
  0xb6   : > { %656 = vbcast.lane.b32.xlu1 %v598_v26, 368 }
  0xb7   : > { %660 = vbcast.lane.b32.xlu0 %v598_v26, 376 }
  0xba   : > { %667 = vbcast.lane.b32.xlu1 %v665_v28, 256 }
  0xbb   : > { %671 = vbcast.lane.b32.xlu0 %v665_v28, 264 }
  0xbe   : > { %675 = vbcast.lane.b32.xlu1 %v665_v28, 272 }
  0xbf   : > { %679 = vbcast.lane.b32.xlu0 %v665_v28, 280 }
  0xc2   : > { %683 = vbcast.lane.b32.xlu1 %v665_v28, 288 }
  0xc3   : > { %687 = vbcast.lane.b32.xlu0 %v665_v28, 296 }
  0xc6   : > { %691 = vbcast.lane.b32.xlu1 %v665_v28, 304 }
  0xc7   : > { %695 = vbcast.lane.b32.xlu0 %v665_v28, 312 }
  0xca   : > { %699 = vbcast.lane.b32.xlu1 %v665_v28, 320 }
  0xcb   : > { %703 = vbcast.lane.b32.xlu0 %v665_v28, 328 }
  0xcc   : > { %v4447_v36 = vpop.permute.xlu1 %470 }
  0xcd   : > { %vm998_vm3 = vcmp.eq.s32.totalorder %v4447_v36, %v4441_v30 }
  0xce   : > { %707 = vbcast.lane.b32.xlu1 %v665_v28, 336 }
  0xcf   : > { %711 = vbcast.lane.b32.xlu0 %v665_v28, 344 }
  0xd0   : > { %v4451_v38 = vpop.permute.xlu1 %474 }
  0xd1   : > { %vm999_vm5 = vcmp.eq.s32.totalorder %v4451_v38, %v4441_v30 }
  0xd2   : > { %715 = vbcast.lane.b32.xlu1 %v665_v28, 352 }
  0xd3   : > { %719 = vbcast.lane.b32.xlu0 %v665_v28, 360 }
  0xd4   : > { %v4455_v40 = vpop.permute.xlu1 %482 }
  0xd6   : > { %v246_v31 = vpop.permute.xlu0 %245  ;;  %723 = vbcast.lane.b32.xlu1 %v665_v28, 368 }
  0xd7   : > { %vm247_vm1 = vcmp.eq.s32.totalorder %v246_v31, %v4441_v30  ;;  %727 = vbcast.lane.b32.xlu0 %v665_v28, 376 }
  0xd8   : > { %vm3300_vm2 = vmpackc.low %vm247_vm1, %vm247_vm1  ;;  %v4460_v43 = vpop.permute.xlu1 %490 }
  0xd9   : > { %3477 = vmatmul.mubr.msk.bf16.vlgmr.msra.gmra.mrb[0].mxu0 %vm3300_vm2, %v4231_v33 }
  0xda   : > { %734 = vbcast.lane.b32.xlu1 %v732_v32, 256  ;;  %v4449_v37 = vpop.permute.xlu0 %466 }
  0xdb   : > { %738 = vbcast.lane.b32.xlu0 %v732_v32, 264  ;;  %vm997_vm4 = vcmp.eq.s32.totalorder %v4449_v37, %v4441_v30 }
  0xdc   : > { %v4465_v46 = vpop.permute.xlu1 %498 }
  0xde   : > { %742 = vbcast.lane.b32.xlu1 %v732_v32, 272  ;;  %v4453_v39 = vpop.permute.xlu0 %478 }
  0xdf   : > { %746 = vbcast.lane.b32.xlu0 %v732_v32, 280  ;;  %vm1000_vm6 = vcmp.eq.s32.totalorder %v4453_v39, %v4441_v30 }
  0xe0   : > { %v4469_v48 = vpop.permute.xlu1 %506 }
  0xe2   : > { %750 = vbcast.lane.b32.xlu1 %v732_v32, 288  ;;  %v4457_v41 = vpop.permute.xlu0 %486 }
  0xe3   : > { %754 = vbcast.lane.b32.xlu0 %v732_v32, 296  ;;  %vm1002_vm7 = vcmp.eq.s32.totalorder %v4457_v41, %v4441_v30 }
  0xe4   : > { %v4473_v50 = vpop.permute.xlu1 %514 }
  0xe6   : > { %758 = vbcast.lane.b32.xlu1 %v732_v32, 304  ;;  %v4462_v44 = vpop.permute.xlu0 %494 }
  0xe7   : > { %762 = vbcast.lane.b32.xlu0 %v732_v32, 312 }
  0xe8   : > { %v4477_v53 = vpop.permute.xlu1 %522 }
  0xe9   : > { %vm1011_vm8 = vcmp.eq.s32.totalorder %v4477_v53, %v4441_v30 }
  0xea   : > { %766 = vbcast.lane.b32.xlu1 %v732_v32, 320  ;;  %v4467_v47 = vpop.permute.xlu0 %502 }
  0xeb   : > { %770 = vbcast.lane.b32.xlu0 %v732_v32, 328 }
  0xec   : > { %v4482_v56 = vpop.permute.xlu1 %533 }
  0xed   : > { %vm1013_vm11 = vcmp.eq.s32.totalorder %v4482_v56, %v4441_v30 }
  0xee   : > { %774 = vbcast.lane.b32.xlu1 %v732_v32, 336  ;;  %v4471_v49 = vpop.permute.xlu0 %510 }
  0xef   : > { %778 = vbcast.lane.b32.xlu0 %v732_v32, 344 }
  0xf0   : > { %v4487_v59 = vpop.permute.xlu1 %541 }
  0xf1   : > { %vm1015_vm13 = vcmp.eq.s32.totalorder %v4487_v59, %v4441_v30 }
  0xf2   : > { %782 = vbcast.lane.b32.xlu1 %v732_v32, 352  ;;  %v4475_v51 = vpop.permute.xlu0 %518 }
  0xf3   : > { %786 = vbcast.lane.b32.xlu0 %v732_v32, 360 }
  0xf4   : > { %v4491_v61 = vpop.permute.xlu1 %549 }
  0xf6   : > { %790 = vbcast.lane.b32.xlu1 %v732_v32, 368  ;;  %v4479_v54 = vpop.permute.xlu0 %526 }
  0xf7   : > { %794 = vbcast.lane.b32.xlu0 %v732_v32, 376  ;;  %vm1012_vm10 = vcmp.eq.s32.totalorder %v4479_v54, %v4441_v30 }
  0xf8   : > { %v4495_v63 = vpop.permute.xlu1 %557 }
  0xfa   : > { %801 = vbcast.lane.b32.xlu1 %v799_v35, 256  ;;  %v4484_v57 = vpop.permute.xlu0 %537 }
  0xfb   : > { %805 = vbcast.lane.b32.xlu0 %v799_v35, 264  ;;  %vm1014_vm12 = vcmp.eq.s32.totalorder %v4484_v57, %v4441_v30 }
  0xfc   : > { %v4499_v1 = vpop.permute.xlu1 %565 }
  0xfe   : > { %809 = vbcast.lane.b32.xlu1 %v799_v35, 272  ;;  %v4489_v60 = vpop.permute.xlu0 %545 }
  0xff   : > { %813 = vbcast.lane.b32.xlu0 %v799_v35, 280  ;;  %vm1016_vm14 = vcmp.eq.s32.totalorder %v4489_v60, %v4441_v30 }
 0x100   : > { %v4503_v5 = vpop.permute.xlu1 %573 }
 0x101   : > { %vm1023_vm9 = vcmp.eq.s32.totalorder %v4503_v5, %v4441_v30 }
 0x102   : > { %817 = vbcast.lane.b32.xlu1 %v799_v35, 288  ;;  %v4493_v62 = vpop.permute.xlu0 %553 }
 0x103   : > { %821 = vbcast.lane.b32.xlu0 %v799_v35, 296 }
 0x104   : > { %v4507_v7 = vpop.permute.xlu1 %581 }
 0x105   : > { %vm1025_vm0 = vcmp.eq.s32.totalorder %v4507_v7, %v4441_v30 }
 0x106   : > { %825 = vbcast.lane.b32.xlu1 %v799_v35, 304  ;;  %v4497_v0 = vpop.permute.xlu0 %561 }
 0x107   : > { %829 = vbcast.lane.b32.xlu0 %v799_v35, 312  ;;  %vm1020_vm2 = vcmp.eq.s32.totalorder %v4497_v0, %v4441_v30 }
 0x108   : > { %v4511_v14 = vpop.permute.xlu1 %589 }
 0x10a   : > { %833 = vbcast.lane.b32.xlu1 %v799_v35, 320  ;;  %v4501_v2 = vpop.permute.xlu0 %569 }
 0x10b   : > { %837 = vbcast.lane.b32.xlu0 %v799_v35, 328 }
 0x10c   : > { %v4515_v16 = vpop.permute.xlu1 %600 }
 0x10e   : > { %841 = vbcast.lane.b32.xlu1 %v799_v35, 336  ;;  %v4505_v6 = vpop.permute.xlu0 %577 }
 0x10f   : > { %845 = vbcast.lane.b32.xlu0 %v799_v35, 344  ;;  %vm1024_vm15 = vcmp.eq.s32.totalorder %v4505_v6, %v4441_v30 }
 0x110   : > { %v4519_v18 = vpop.permute.xlu1 %608 }
 0x112   : > { %849 = vbcast.lane.b32.xlu1 %v799_v35, 352  ;;  %v4509_v8 = vpop.permute.xlu0 %585 }
 0x113   : > { %853 = vbcast.lane.b32.xlu0 %v799_v35, 360  ;;  %vm1026_vm1 = vcmp.eq.s32.totalorder %v4509_v8, %v4441_v30 }
 0x114   : > { %v4523_v20 = vpop.permute.xlu1 %616 }
 0x116   : > { %857 = vbcast.lane.b32.xlu1 %v799_v35, 368  ;;  %v4513_v15 = vpop.permute.xlu0 %593 }
 0x117   : > { %861 = vbcast.lane.b32.xlu0 %v799_v35, 376 }
 0x118   : > { %v4527_v22 = vpop.permute.xlu1 %624 }
 0x11a   : > { %868 = vbcast.lane.b32.xlu1 %v866_v45, 256  ;;  %v4517_v17 = vpop.permute.xlu0 %604 }
 0x11b   : > { %872 = vbcast.lane.b32.xlu0 %v866_v45, 264 }
 0x11c   : > { %v4531_v24 = vpop.permute.xlu1 %632 }
 0x11e   : > { %876 = vbcast.lane.b32.xlu1 %v866_v45, 272  ;;  %v4521_v19 = vpop.permute.xlu0 %612 }
 0x11f   : > { %880 = vbcast.lane.b32.xlu0 %v866_v45, 280 }
 0x120   : > { %v4535_v26 = vpop.permute.xlu1 %640 }
 0x122   : > { %884 = vbcast.lane.b32.xlu1 %v866_v45, 288  ;;  %v4525_v21 = vpop.permute.xlu0 %620 }
 0x123   : > { %888 = vbcast.lane.b32.xlu0 %v866_v45, 296 }
 0x124   : > { %v4539_v28 = vpop.permute.xlu1 %648 }
 0x125   : > { %5947 = vst [vmem:[#allocation11_spill] sm:$0xff] %v4539_v28 }
 0x126   : > { %892 = vbcast.lane.b32.xlu1 %v866_v45, 304  ;;  %v4529_v23 = vpop.permute.xlu0 %628 }
 0x127   : > { %896 = vbcast.lane.b32.xlu0 %v866_v45, 312 }
 0x128   : > { %v4543_v31 = vpop.permute.xlu1 %656 }
 0x129   : > { %5948 = vst [vmem:[#allocation12_spill] sm:$0xff] %v4543_v31 }
 0x12a   : > { %900 = vbcast.lane.b32.xlu1 %v866_v45, 320  ;;  %v4533_v25 = vpop.permute.xlu0 %636 }
 0x12b   : > { %904 = vbcast.lane.b32.xlu0 %v866_v45, 328 }
 0x12c   : > { %v4547_v33 = vpop.permute.xlu1 %667 }
 0x12d   : > { %5950 = vst [vmem:[#allocation14_spill] sm:$0xff] %v4547_v33 }
 0x12e   : > { %908 = vbcast.lane.b32.xlu1 %v866_v45, 336  ;;  %v4537_v27 = vpop.permute.xlu0 %644 }
 0x12f   : > { %912 = vbcast.lane.b32.xlu0 %v866_v45, 344 }
 0x130   : > { %v4551_v35 = vpop.permute.xlu1 %675 }
 0x131   : > { %5952 = vst [vmem:[#allocation16_spill] sm:$0xff] %v4551_v35 }
 0x132   : > { %916 = vbcast.lane.b32.xlu1 %v866_v45, 352  ;;  %v4541_v29 = vpop.permute.xlu0 %652 }
 0x133   : > { %920 = vbcast.lane.b32.xlu0 %v866_v45, 360 }
 0x136   : > { %924 = vbcast.lane.b32.xlu1 %v866_v45, 368  ;;  %v4545_v32 = vpop.permute.xlu0 %660 }
 0x137   : > { %928 = vbcast.lane.b32.xlu0 %v866_v45, 376  ;;  %5949 = vst [vmem:[#allocation13_spill] sm:$0xff] %v4545_v32  ;;  %v4555_v45 = vpop.permute.xlu1 %683 }
 0x138   : > { %5954 = vst [vmem:[#allocation18_spill] sm:$0xff] %v4555_v45 }
 0x13a   : > { %935 = vbcast.lane.b32.xlu1 %v933_v58, 256  ;;  %v4549_v34 = vpop.permute.xlu0 %671 }
 0x13b   : > { %939 = vbcast.lane.b32.xlu0 %v933_v58, 264  ;;  %5951 = vst [vmem:[#allocation15_spill] sm:$0xff] %v4549_v34  ;;  %v4559_v55 = vpop.permute.xlu1 %691 }
 0x13c   : > { %5956 = vst [vmem:[#allocation20_spill] sm:$0xff] %v4559_v55 }
 0x13e   : > { %943 = vbcast.lane.b32.xlu1 %v933_v58, 272  ;;  %v4553_v42 = vpop.permute.xlu0 %679 }
 0x13f   : > { %947 = vbcast.lane.b32.xlu0 %v933_v58, 280  ;;  %5953 = vst [vmem:[#allocation17_spill] sm:$0xff] %v4553_v42 }
 0x142   : > { %951 = vbcast.lane.b32.xlu1 %v933_v58, 288  ;;  %v4557_v52 = vpop.permute.xlu0 %687 }
 0x143   : > { %955 = vbcast.lane.b32.xlu0 %v933_v58, 296  ;;  %5955 = vst [vmem:[#allocation19_spill] sm:$0xff] %v4557_v52 }
 0x146   : > { %959 = vbcast.lane.b32.xlu1 %v933_v58, 304 }
 0x147   : > { %963 = vbcast.lane.b32.xlu0 %v933_v58, 312 }
 0x14a   : > { %967 = vbcast.lane.b32.xlu1 %v933_v58, 320 }
 0x14b   : > { %971 = vbcast.lane.b32.xlu0 %v933_v58, 328 }
 0x14e   : > { %975 = vbcast.lane.b32.xlu1 %v933_v58, 336 }
 0x14f   : > { %979 = vbcast.lane.b32.xlu0 %v933_v58, 344 }
 0x152   : > { %983 = vbcast.lane.b32.xlu1 %v933_v58, 352 }
 0x153   : > { %987 = vbcast.lane.b32.xlu0 %v933_v58, 360 }
 0x156   : > { %991 = vbcast.lane.b32.xlu1 %v933_v58, 368 }
 0x157   : > { %995 = vbcast.lane.b32.xlu0 %v933_v58, 376  ;;  %v4561_v58 = vpop.permute.xlu0 %695 }
 0x158   : > { %5957 = vst [vmem:[#allocation21_spill] sm:$0xff] %v4561_v58 }
 0x1ac   : > { %v349_v9 = vpop.f32.mrb[0].mxu0 }
 0x1ad   : > { %v355_v10 = vpack.c.bf16 %v349_v9, %v349_v9  ;;  %v3478_v11 = vpop.f32.mrb[1].mxu0  ;;  %v4563_v9 = vpop.permute.xlu1 %699 }
 0x1ae   : > { %v352_v12 = vpop.f32.mrb[2].mxu0  ;;  %5958 = vst [vmem:[#allocation22_spill] sm:$0xff] %v4563_v9 }
 0x1af   : > { %v3479_v13 = vpop.f32.mrb[3].mxu0  ;;  %3497 = vmatmul.mubr.bf16.vlgmr.msra.gmra.mrb[0].mxu1 %v355_v10  ;;  %v4565_v10 = vpop.permute.xlu0 %703 }
 0x1b0   : > { %5959 = vst [vmem:[#allocation23_spill] sm:$0xff] %v4565_v10 }
 0x1b1   : > { %v4567_v11 = vpop.permute.xlu1 %707 }
 0x1b2   : > { %5960 = vst [vmem:[#allocation24_spill] sm:$0xff] %v4567_v11 }
 0x1b3   : > { %v4569_v12 = vpop.permute.xlu0 %711 }
 0x1b4   : > { %5961 = vst [vmem:[#allocation25_spill] sm:$0xff] %v4569_v12 }
 0x1b5   : > { %v4571_v13 = vpop.permute.xlu1 %715 }
 0x1b6   : > { %5962 = vst [vmem:[#allocation26_spill] sm:$0xff] %v4571_v13 }
 0x1b7   : > { %v4573_v35 = vpop.permute.xlu0 %719 }
 0x1b8   : > { %5963 = vst [vmem:[#allocation27_spill] sm:$0xff] %v4573_v35 }
 0x1b9   : > { %v4575_v33 = vpop.permute.xlu1 %723 }
 0x1ba   : > { %5964 = vst [vmem:[#allocation28_spill] sm:$0xff] %v4575_v33 }
 0x1bb   : > { %v4577_v45 = vpop.permute.xlu0 %727 }
 0x1bc   : > { %5965 = vst [vmem:[#allocation29_spill] sm:$0xff] %v4577_v45  ;;  %v4232_v45 = vmov 1966171168  }
 0x1bd   : > { %v4579_v52 = vpop.permute.xlu1 %734  ;;  %v1128_v42 = vunpack.c.l.s4 %v4232_v45 }
 0x1be   : > { %5966 = vst [vmem:[#allocation30_spill] sm:$0xff] %v4579_v52 }
 0x1bf   : > { %v4581_v55 = vpop.permute.xlu0 %738 }
 0x1c0   : > { %5967 = vst [vmem:[#allocation31_spill] sm:$0xff] %v4581_v55 }
 0x1c1   : > { %v4583_v58 = vpop.permute.xlu1 %742 }
 0x1c2   : > { %5968 = vst [vmem:[#allocation32_spill] sm:$0xff] %v4583_v58  ;;  %v1129_v58 = vunpack.c.0.s8 %v1128_v42 }
 0x1c3   : > { %v4585_v9 = vpop.permute.xlu0 %746 }
 0x1c4   : > { %5969 = vst [vmem:[#allocation33_spill] sm:$0xff] %v4585_v9 }
 0x1c5   : > { %v4587_v10 = vpop.permute.xlu1 %750 }
 0x1c6   : > { %5970 = vst [vmem:[#allocation34_spill] sm:$0xff] %v4587_v10 }
 0x1c7   : > { %v4589_v11 = vpop.permute.xlu0 %754 }
 0x1c8   : > { %5971 = vst [vmem:[#allocation35_spill] sm:$0xff] %v4589_v11  ;;  %v1132_v11 = vsub.s32 %v1129_v58, %v4383_v3 }
 0x1c9   : > { %v4591_v12 = vpop.permute.xlu1 %758 }
 0x1ca   : > { %5972 = vst [vmem:[#allocation36_spill] sm:$0xff] %v4591_v12 }
 0x1cb   : > { %v4593_v13 = vpop.permute.xlu0 %762 }
 0x1cc   : > { %5973 = vst [vmem:[#allocation37_spill] sm:$0xff] %v4593_v13 }
 0x1cd   : > { %v4595_v35 = vpop.permute.xlu1 %766 }
 0x1ce   : > { %5974 = vst [vmem:[#allocation38_spill] sm:$0xff] %v4595_v35 }
 0x1cf   : > { %v4597_v33 = vpop.permute.xlu0 %770 }
 0x1d0   : > { %5975 = vst [vmem:[#allocation39_spill] sm:$0xff] %v4597_v33 }
 0x1d1   : > { %v4599_v34 = vpop.permute.xlu1 %774 }
 0x1d2   : > { %5976 = vst [vmem:[#allocation40_spill] sm:$0xff] %v4599_v34 }
 0x1d3   : > { %v4601_v52 = vpop.permute.xlu0 %778 }
 0x1d4   : > { %5977 = vst [vmem:[#allocation41_spill] sm:$0xff] %v4601_v52 }
 0x1d5   : > { %v4603_v9 = vpop.permute.xlu1 %782 }
 0x1d6   : > { %5978 = vst [vmem:[#allocation42_spill] sm:$0xff] %v4603_v9 }
 0x1d7   : > { %v4605_v10 = vpop.permute.xlu0 %786 }
 0x1d8   : > { %5979 = vst [vmem:[#allocation43_spill] sm:$0xff] %v4605_v10 }
 0x1d9   : > { %v4608_v35 = vpop.permute.xlu1 %790 }
 0x1db   : > { %v4610_v32 = vpop.permute.xlu0 %794 }
 0x1dd   : > { %v4642_v37 = vpop.permute.xlu1 %801 }
 0x282   : > { %v454_v12 = vpop.f32.mrb[0].mxu1 }
 0x283   : > { %v1126_v55 = vcombine.high %v454_v12, %v454_v12  ;;  %v1133_v13 = vrot.slane %v454_v12, %v1132_v11  ;;  %v3498_v31 = vpop.f32.mrb[1].mxu1 }
 0x284   : > { %v457_v33 = vpop.f32.mrb[2].mxu1 }
 0x285   : > { %v1140_v45 = vrot.slane %v1126_v55, %v1132_v11  ;;  %v1141_v34 = vcombine.high %v1133_v13, %v1133_v13  ;;  %v4612_v28 = vrot.slane %v1133_v13, %v1132_v11  ;;  %v3499_v42 = vpop.f32.mrb[3].mxu1 }
 0x287   : > { %v1142_v52 = vcombine.high %v1140_v45, %v1140_v45  ;;  %v4614_v9 = vrot.slane %v1140_v45, %v1132_v11  ;;  %v4616_v10 = vrot.slane %v1141_v34, %v1132_v11  ;;  %v4626_v31 = vrot.slane %v4612_v28, %v4387_v4  ;;  %v4702_v45 = vpop.permute.xlu1 %809 }
 0x289   : > { %v4634_v36 = vrot.slane %v1142_v52, %v1132_v11  ;;  %v1215_v33 = vsel %vm997_vm4, %v4626_v31, 0.0  ;;  %v1216_v34 = vsel %vm998_vm3, %v4626_v31, 0.0  ;;  %v4652_v52 = vpop.permute.xlu0 %805  ;;  %v4656_v55 = vrot.slane %v4616_v10, %v4387_v4 }
 0x28a   : > { %1343 = vadd.xlane.f32.xlu1 %v1215_v33  ;;  %1345 = vadd.xlane.f32.xlu0 %v1216_v34  ;;  %vm1021_vm3 = vcmp.eq.s32.totalorder %v4499_v1, %v4441_v30  ;;  %vm1022_vm4 = vcmp.eq.s32.totalorder %v4501_v2, %v4441_v30  ;;  %v1218_v58 = vsel %vm1000_vm6, %v4626_v31, 0.0  ;;  %v1217_v11 = vsel %vm999_vm5, %v4626_v31, 0.0 }
 0x28b   : > { %v1220_v12 = vsel %vm1002_vm7, %v4626_v31, 0.0  ;;  %v1230_v13 = vsel %vm1012_vm10, %v4626_v31, 0.0  ;;  %v1229_v39 = vsel %vm1011_vm8, %v4626_v31, 0.0  ;;  %v1232_v38 = vsel %vm1014_vm12, %v4656_v55, 0.0  ;;  %v4766_v5 = vpop.permute.xlu1 %817 }
 0x28c   : > { %v1231_v41 = vsel %vm1013_vm11, %v4656_v55, 0.0  ;;  %v1234_v54 = vsel %vm1016_vm14, %v4656_v55, 0.0  ;;  %v1233_v53 = vsel %vm1015_vm13, %v4656_v55, 0.0  ;;  %vm5980_vm5 = vcmp.eq.s32.totalorder %v4493_v62, %v4441_v30 }
 0x28d   : > { %v1236_v57 = vsel %vm5980_vm5, %v4656_v55, 0.0  ;;  %v4720_v42 = vpop.permute.xlu0 %813  ;;  %vm5981_vm6 = vcmp.eq.s32.totalorder %v4491_v61, %v4441_v30  ;;  %v1238_v60 = vsel %vm1020_vm2, %v4656_v55, 0.0  ;;  %vm5982_vm7 = vcmp.eq.s32.totalorder %v4495_v63, %v4441_v30 }
 0x28e   : > { %1349 = vadd.xlane.f32.xlu1 %v1218_v58  ;;  %1347 = vadd.xlane.f32.xlu0 %v1217_v11  ;;  %v1235_v56 = vsel %vm5981_vm6, %v4656_v55, 0.0  ;;  %v1237_v59 = vsel %vm5982_vm7, %v4656_v55, 0.0  ;;  %v1240_v62 = vsel %vm1022_vm4, %v4656_v55, 0.0  ;;  %v1239_v61 = vsel %vm1021_vm3, %v4656_v55, 0.0 }
 0x28f   : > { %v1242_v0 = vsel %vm1024_vm15, %v4656_v55, 0.0  ;;  %v1241_v63 = vsel %vm1023_vm9, %v4656_v55, 0.0  ;;  %v1244_v2 = vsel %vm1026_vm1, %v4656_v55, 0.0  ;;  %vm5983_vm8 = vcmp.eq.s32.totalorder %v4455_v40, %v4441_v30  ;;  %v4778_v7 = vpop.permute.xlu1 %825 }
 0x290   : > { %v1219_v1 = vsel %vm5983_vm8, %v4626_v31, 0.0  ;;  %v1243_v6 = vsel %vm1025_vm0, %v4656_v55, 0.0  ;;  %vm1004_vm9 = vcmp.eq.s32.totalorder %v4462_v44, %v4441_v30  ;;  %vm1003_vm10 = vcmp.eq.s32.totalorder %v4460_v43, %v4441_v30 }
 0x291   : > { %v1222_v8 = vsel %vm1004_vm9, %v4626_v31, 0.0  ;;  %v4769_v33 = vpop.permute.xlu0 %821  ;;  %v1221_v40 = vsel %vm1003_vm10, %v4626_v31, 0.0  ;;  %vm1006_vm11 = vcmp.eq.s32.totalorder %v4467_v47, %v4441_v30  ;;  %vm1005_vm12 = vcmp.eq.s32.totalorder %v4465_v46, %v4441_v30 }
 0x292   : > { %1353 = vadd.xlane.f32.xlu1 %v1220_v12  ;;  %1351 = vadd.xlane.f32.xlu0 %v1219_v1  ;;  %v1224_v44 = vsel %vm1006_vm11, %v4626_v31, 0.0  ;;  %v1223_v43 = vsel %vm1005_vm12, %v4626_v31, 0.0  ;;  %vm1008_vm13 = vcmp.eq.s32.totalorder %v4471_v49, %v4441_v30  ;;  %vm1007_vm14 = vcmp.eq.s32.totalorder %v4469_v48, %v4441_v30 }
 0x293   : > { %v1226_v47 = vsel %vm1008_vm13, %v4626_v31, 0.0  ;;  %v1225_v46 = vsel %vm1007_vm14, %v4626_v31, 0.0  ;;  %vm1010_vm15 = vcmp.eq.s32.totalorder %v4475_v51, %v4441_v30  ;;  %vm1009_vm0 = vcmp.eq.s32.totalorder %v4473_v50, %v4441_v30  ;;  %v4792_v58 = vpop.permute.xlu1 %833 }
 0x294   : > { %v1228_v49 = vsel %vm1010_vm15, %v4626_v31, 0.0  ;;  %v1227_v48 = vsel %vm1009_vm0, %v4626_v31, 0.0  ;;  %vm1028_vm1 = vcmp.eq.s32.totalorder %v4513_v15, %v4441_v30  ;;  %vm1027_vm2 = vcmp.eq.s32.totalorder %v4511_v14, %v4441_v30 }
 0x295   : > { %v4782_v34 = vpop.permute.xlu0 %829  ;;  %vm1030_vm3 = vcmp.eq.s32.totalorder %v4517_v17, %v4441_v30  ;;  %vm1029_vm4 = vcmp.eq.s32.totalorder %v4515_v16, %v4441_v30  ;;  %vm1032_vm5 = vcmp.eq.s32.totalorder %v4521_v19, %v4441_v30  ;;  %vm1031_vm6 = vcmp.eq.s32.totalorder %v4519_v18, %v4441_v30 }
 0x296   : > { %1357 = vadd.xlane.f32.xlu1 %v1222_v8  ;;  %1355 = vadd.xlane.f32.xlu0 %v1221_v40  ;;  %vm1034_vm7 = vcmp.eq.s32.totalorder %v4525_v21, %v4441_v30  ;;  %vm1033_vm8 = vcmp.eq.s32.totalorder %v4523_v20, %v4441_v30  ;;  %vm1036_vm9 = vcmp.eq.s32.totalorder %v4529_v23, %v4441_v30  ;;  %v5986_v40 = vld [vmem:[#allocation11_spill] sm:$0xff] }
 0x297   : > { %v4798_v12 = vpop.permute.xlu1 %841  ;;  %vm1035_vm10 = vcmp.eq.s32.totalorder %v4527_v22, %v4441_v30  ;;  %vm1038_vm11 = vcmp.eq.s32.totalorder %v4533_v25, %v4441_v30  ;;  %vm1037_vm12 = vcmp.eq.s32.totalorder %v4531_v24, %v4441_v30  ;;  %vm1040_vm13 = vcmp.eq.s32.totalorder %v4537_v27, %v4441_v30 }
 0x298   : > { %vm1039_vm14 = vcmp.eq.s32.totalorder %v4535_v26, %v4441_v30  ;;  %vm1042_vm15 = vcmp.eq.s32.totalorder %v4541_v29, %v4441_v30  ;;  %vm1041_vm0 = vcmp.eq.s32.totalorder %v5986_v40, %v4441_v30  ;;  %v4901_v29 = vrot.slane %v4614_v9, %v4387_v4 }
 0x299   : > { %v4795_v11 = vpop.permute.xlu0 %837 }
 0x29a   : > { %1361 = vadd.xlane.f32.xlu1 %v1224_v44  ;;  %1359 = vadd.xlane.f32.xlu0 %v1223_v43  ;;  %v5987_v43 = vld [vmem:[#allocation13_spill] sm:$0xff] }
 0x29b   : > { %v4802_v51 = vpop.permute.xlu1 %849 }
 0x29d   : > { %v4800_v1 = vpop.permute.xlu0 %845 }
 0x29e   : > { %1365 = vadd.xlane.f32.xlu1 %v1226_v47  ;;  %1363 = vadd.xlane.f32.xlu0 %v1225_v46  ;;  %v5988_v46 = vld [vmem:[#allocation12_spill] sm:$0xff] }
 0x29f   : > { %v4806_v8 = vpop.permute.xlu1 %857 }
 0x2a1   : > { %v4804_v50 = vpop.permute.xlu0 %853 }
 0x2a2   : > { %1369 = vadd.xlane.f32.xlu1 %v1228_v49  ;;  %1367 = vadd.xlane.f32.xlu0 %v1227_v48 }
 0x2a5   : > { %v4808_v31 = vpop.permute.xlu0 %861 }
 0x2a6   : > { %1373 = vadd.xlane.f32.xlu1 %v1230_v13  ;;  %1371 = vadd.xlane.f32.xlu0 %v1229_v39  ;;  %5984 = vst [vmem:[#allocation44_spill] sm:$0xff] %v4808_v31  ;;  %v4810_v13 = vpop.permute.xlu1 %868 }
 0x2a9   : > { %v4812_v39 = vpop.permute.xlu0 %872 }
 0x2aa   : > { %1377 = vadd.xlane.f32.xlu1 %v1232_v38  ;;  %1375 = vadd.xlane.f32.xlu0 %v1231_v41  ;;  %v4814_v38 = vpop.permute.xlu1 %876 }
 0x2ad   : > { %v4816_v41 = vpop.permute.xlu0 %880 }
 0x2ae   : > { %1381 = vadd.xlane.f32.xlu1 %v1234_v54  ;;  %1379 = vadd.xlane.f32.xlu0 %v1233_v53  ;;  %v1171_v54 = vcombine.high %v4612_v28, %v4612_v28  ;;  %v4824_v53 = vpop.permute.xlu1 %884  ;;  %v1245_v28 = vsel %vm1027_vm2, %v4656_v55, 0.0  ;;  %vm1043_vm2 = vcmp.eq.s32.totalorder %v5988_v46, %v4441_v30 }
 0x2b2   : > { %1385 = vadd.xlane.f32.xlu1 %v1236_v57  ;;  %1383 = vadd.xlane.f32.xlu0 %v1235_v56  ;;  %v4827_v57 = vrot.slane %v1171_v54, %v4387_v4  ;;  %v1246_v56 = vsel %vm1028_vm1, %v4656_v55, 0.0  ;;  %vm1044_vm1 = vcmp.eq.s32.totalorder %v5987_v43, %v4441_v30  ;;  %v5989_v54 = vld [vmem:[#allocation31_spill] sm:$0xff] }
 0x2b4   : > { %v1248_v14 = vsel %vm1030_vm3, %v4827_v57, 0.0  ;;  %v1247_v15 = vsel %vm1029_vm4, %v4827_v57, 0.0  ;;  %v1250_v17 = vsel %vm1032_vm5, %v4827_v57, 0.0  ;;  %v1249_v16 = vsel %vm1031_vm6, %v4827_v57, 0.0 }
 0x2b5   : > { %v1252_v19 = vsel %vm1034_vm7, %v4827_v57, 0.0  ;;  %v1251_v18 = vsel %vm1033_vm8, %v4827_v57, 0.0  ;;  %v1254_v21 = vsel %vm1036_vm9, %v4827_v57, 0.0  ;;  %v1253_v20 = vsel %vm1035_vm10, %v4827_v57, 0.0 }
 0x2b6   : > { %1389 = vadd.xlane.f32.xlu1 %v1238_v60  ;;  %1387 = vadd.xlane.f32.xlu0 %v1237_v59  ;;  %v4830_v60 = vpop.permute.xlu0 %888  ;;  %v4839_v59 = vpop.permute.xlu1 %892  ;;  %v1256_v23 = vsel %vm1038_vm11, %v4827_v57, 0.0  ;;  %v1255_v22 = vsel %vm1037_vm12, %v4827_v57, 0.0  ;;  %v1258_v25 = vsel %vm1040_vm13, %v4827_v57, 0.0  ;;  %v1257_v24 = vsel %vm1039_vm14, %v4827_v57, 0.0 }
 0x2b7   : > { %v1260_v27 = vsel %vm1042_vm15, %v4827_v57, 0.0  ;;  %v1259_v26 = vsel %vm1041_vm0, %v4827_v57, 0.0  ;;  %v1262_v49 = vsel %vm1044_vm1, %v4827_v57, 0.0  ;;  %v1261_v48 = vsel %vm1043_vm2, %v4827_v57, 0.0  ;;  %v5991_v57 = vld [vmem:[#allocation33_spill] sm:$0xff] }
 0x2b8   : > { %vm1062_vm3 = vcmp.eq.s32.totalorder %v5989_v54, %v4441_v30  ;;  %vm1064_vm5 = vcmp.eq.s32.totalorder %v5991_v57, %v4441_v30  ;;  %v5997_v54 = vld [vmem:[#allocation19_spill] sm:$0xff]  ;;  %v5999_v57 = vld [vmem:[#allocation21_spill] sm:$0xff] }
 0x2b9   : > { %vm1050_vm11 = vcmp.eq.s32.totalorder %v5997_v54, %v4441_v30  ;;  %vm1052_vm13 = vcmp.eq.s32.totalorder %v5999_v57, %v4441_v30  ;;  %v6005_v54 = vld [vmem:[#allocation39_spill] sm:$0xff] }
 0x2ba   : > { %1393 = vadd.xlane.f32.xlu1 %v1240_v62  ;;  %1391 = vadd.xlane.f32.xlu0 %v1239_v61  ;;  %v4843_v62 = vpop.permute.xlu0 %896  ;;  %v4853_v55 = vpop.permute.xlu1 %900  ;;  %vm1070_vm2 = vcmp.eq.s32.totalorder %v6005_v54, %v4441_v30  ;;  %v6007_v57 = vld [vmem:[#allocation27_spill] sm:$0xff] }
 0x2be   : > { %1397 = vadd.xlane.f32.xlu1 %v1242_v0  ;;  %1395 = vadd.xlane.f32.xlu0 %v1241_v63  ;;  %v4856_v61 = vpop.permute.xlu0 %904  ;;  %v4865_v0 = vpop.permute.xlu1 %908 }
 0x2c2   : > { %1401 = vadd.xlane.f32.xlu1 %v1244_v2  ;;  %1399 = vadd.xlane.f32.xlu0 %v1243_v6  ;;  %v4869_v63 = vpop.permute.xlu0 %912  ;;  %v4879_v2 = vpop.permute.xlu1 %916 }
 0x2c6   : > { %1405 = vadd.xlane.f32.xlu1 %v1246_v56  ;;  %1403 = vadd.xlane.f32.xlu0 %v1245_v28  ;;  %v4882_v6 = vpop.permute.xlu0 %920  ;;  %v4891_v44 = vpop.permute.xlu1 %924  ;;  %v5990_v56 = vld [vmem:[#allocation30_spill] sm:$0xff] }
 0x2c7   : > { %5985 = vst [vmem:[#allocation45_spill] sm:$0xff] %v4882_v6  ;;  %vm1061_vm4 = vcmp.eq.s32.totalorder %v5990_v56, %v4441_v30  ;;  %v5998_v56 = vld [vmem:[#allocation36_spill] sm:$0xff] }
 0x2c8   : > { %vm1067_vm12 = vcmp.eq.s32.totalorder %v5998_v56, %v4441_v30 }
 0x2ca   : > { %1409 = vadd.xlane.f32.xlu1 %v1248_v14  ;;  %1407 = vadd.xlane.f32.xlu0 %v1247_v15  ;;  %v4895_v47 = vpop.permute.xlu0 %928  ;;  %v4909_v28 = vpop.permute.xlu1 %935  ;;  %v1173_v14 = vcombine.high %v4616_v10, %v4616_v10  ;;  %v1280_v15 = vsel %vm1062_vm3, %v4901_v29, 0.0  ;;  %vm1058_vm3 = vcmp.eq.s32.totalorder %v6007_v57, %v4441_v30  ;;  %v6015_v57 = vld [vmem:[#allocation42_spill] sm:$0xff] }
 0x2ce   : > { %1413 = vadd.xlane.f32.xlu1 %v1250_v17  ;;  %1411 = vadd.xlane.f32.xlu0 %v1249_v16  ;;  %v4914_v17 = vpop.permute.xlu0 %939  ;;  %v1279_v16 = vsel %vm1061_vm4, %v4901_v29, 0.0 }
 0x2d2   : > { %1417 = vadd.xlane.f32.xlu1 %v1252_v19  ;;  %1415 = vadd.xlane.f32.xlu0 %v1251_v18  ;;  %v5992_v19 = vld [vmem:[#allocation32_spill] sm:$0xff]  ;;  %v4922_v18 = vrot.slane %v1173_v14, %v4387_v4 }
 0x2d3   : > { %vm1063_vm6 = vcmp.eq.s32.totalorder %v5992_v19, %v4441_v30 }
 0x2d4   : > { %v1281_v10 = vsel %vm1063_vm6, %v4901_v29, 0.0  ;;  %v1268_v14 = vsel %vm1050_vm11, %v4922_v18, 0.0  ;;  %vm1094_vm11 = vcmp.eq.s32.totalorder %v4812_v39, %v4441_v30 }
 0x2d6   : > { %1421 = vadd.xlane.f32.xlu1 %v1254_v21  ;;  %1419 = vadd.xlane.f32.xlu0 %v1253_v20  ;;  %v1282_v21 = vsel %vm1064_vm5, %v4901_v29, 0.0  ;;  %v4926_v20 = vpop.permute.xlu1 %943 }
 0x2da   : > { %1425 = vadd.xlane.f32.xlu1 %v1256_v23  ;;  %1423 = vadd.xlane.f32.xlu0 %v1255_v22  ;;  %v5993_v23 = vld [vmem:[#allocation15_spill] sm:$0xff]  ;;  %v4930_v22 = vpop.permute.xlu0 %947  ;;  %v4940_v43 = vpop.permute.xlu1 %951 }
 0x2db   : > { %vm1046_vm7 = vcmp.eq.s32.totalorder %v5993_v23, %v4441_v30 }
 0x2de   : > { %1429 = vadd.xlane.f32.xlu1 %v1258_v25  ;;  %1427 = vadd.xlane.f32.xlu0 %v1257_v24  ;;  %v5994_v25 = vld [vmem:[#allocation34_spill] sm:$0xff]  ;;  %v1264_v24 = vsel %vm1046_vm7, %v4922_v18, 0.0  ;;  %vm1077_vm7 = vcmp.eq.s32.totalorder %v4642_v37, %v4441_v30  ;;  %v6018_v37 = vld [vmem:[#allocation43_spill] sm:$0xff] }
 0x2df   : > { %vm1065_vm8 = vcmp.eq.s32.totalorder %v5994_v25, %v4441_v30  ;;  %v6001_v25 = vld [vmem:[#allocation23_spill] sm:$0xff] }
 0x2e0   : > { %v1283_v40 = vsel %vm1065_vm8, %v4901_v29, 0.0  ;;  %vm1054_vm15 = vcmp.eq.s32.totalorder %v6001_v25, %v4441_v30  ;;  %vm1073_vm8 = vcmp.eq.s32.totalorder %v6015_v57, %v4441_v30 }
 0x2e2   : > { %1433 = vadd.xlane.f32.xlu1 %v1260_v27  ;;  %1431 = vadd.xlane.f32.xlu0 %v1259_v26  ;;  %v5995_v27 = vld [vmem:[#allocation17_spill] sm:$0xff]  ;;  %v5996_v26 = vld [vmem:[#allocation35_spill] sm:$0xff] }
 0x2e3   : > { %vm1048_vm9 = vcmp.eq.s32.totalorder %v5995_v27, %v4441_v30  ;;  %vm1066_vm10 = vcmp.eq.s32.totalorder %v5996_v26, %v4441_v30  ;;  %v1272_v27 = vsel %vm1054_vm15, %v4922_v18, 0.0 }
 0x2e4   : > { %v1266_v46 = vsel %vm1048_vm9, %v4922_v18, 0.0  ;;  %vm1079_vm9 = vcmp.eq.s32.totalorder %v4702_v45, %v4441_v30 }
 0x2e6   : > { %1437 = vadd.xlane.f32.xlu1 %v1262_v49  ;;  %1435 = vadd.xlane.f32.xlu0 %v1261_v48  ;;  %v4943_v49 = vpop.permute.xlu0 %955  ;;  %v1284_v48 = vsel %vm1066_vm10, %v4901_v29, 0.0  ;;  %vm1074_vm10 = vcmp.eq.s32.totalorder %v6018_v37, %v4441_v30 }
 0x2ea   : > { %1473 = vadd.xlane.f32.xlu1 %v1280_v15  ;;  %1471 = vadd.xlane.f32.xlu0 %v1279_v16  ;;  %v1285_v15 = vsel %vm1067_vm12, %v4901_v29, 0.0  ;;  %v4952_v16 = vpop.permute.xlu1 %959  ;;  %v4956_v19 = vpop.permute.xlu0 %963  ;;  %vm1075_vm12 = vcmp.eq.s32.totalorder %v4608_v35, %v4441_v30  ;;  %v6021_v35 = vld [vmem:[#allocation18_spill] sm:$0xff] }
 0x2eb   : > { %v1293_v39 = vsel %vm1075_vm12, %v4901_v29, 0.0  ;;  %vm1078_vm12 = vcmp.eq.s32.totalorder %v4652_v52, %v4441_v30 }
 0x2ee   : > { %1477 = vadd.xlane.f32.xlu1 %v1282_v21  ;;  %1475 = vadd.xlane.f32.xlu0 %v1281_v10  ;;  %v6000_v21 = vld [vmem:[#allocation37_spill] sm:$0xff]  ;;  %v1270_v10 = vsel %vm1052_vm13, %v4922_v18, 0.0  ;;  %v4969_v26 = vpop.permute.xlu0 %971  ;;  %vm1095_vm13 = vcmp.eq.s32.totalorder %v4814_v38, %v4441_v30  ;;  %v6022_v38 = vld [vmem:[#allocation20_spill] sm:$0xff] }
 0x2ef   : > { %vm1068_vm14 = vcmp.eq.s32.totalorder %v6000_v21, %v4441_v30  ;;  %6003 = vst [vmem:[#allocation11_spill] sm:$0xff] %v4969_v26 }
 0x2f0   : > { %v1286_v23 = vsel %vm1068_vm14, %v4901_v29, 0.0 }
 0x2f2   : > { %1441 = vadd.xlane.f32.xlu1 %v1264_v24  ;;  %1479 = vadd.xlane.f32.xlu0 %v1283_v40  ;;  %v6002_v24 = vld [vmem:[#allocation38_spill] sm:$0xff]  ;;  %v4966_v40 = vpop.permute.xlu1 %967  ;;  %v4982_v21 = vpop.permute.xlu0 %979 }
 0x2f3   : > { %vm1069_vm0 = vcmp.eq.s32.totalorder %v6002_v24, %v4441_v30  ;;  %6008 = vst [vmem:[#allocation12_spill] sm:$0xff] %v4982_v21  ;;  %v6010_v24 = vld [vmem:[#allocation29_spill] sm:$0xff] }
 0x2f4   : > { %vm1060_vm5 = vcmp.eq.s32.totalorder %v6010_v24, %v4441_v30 }
 0x2f5   : > { %v1278_v54 = vsel %vm1060_vm5, %v4922_v18, 0.0  ;;  %vm1081_vm5 = vcmp.eq.s32.totalorder %v4766_v5, %v4441_v30 }
 0x2f6   : > { %1445 = vadd.xlane.f32.xlu1 %v1266_v46  ;;  %1481 = vadd.xlane.f32.xlu0 %v1284_v48  ;;  %v1287_v46 = vsel %vm1069_vm0, %v4901_v29, 0.0  ;;  %v6004_v48 = vld [vmem:[#allocation25_spill] sm:$0xff]  ;;  %vm1049_vm0 = vcmp.eq.s32.totalorder %v6021_v35, %v4441_v30 }
 0x2f7   : > { %vm1056_vm1 = vcmp.eq.s32.totalorder %v6004_v48, %v4441_v30 }
 0x2f8   : > { %v1274_v56 = vsel %vm1056_vm1, %v4922_v18, 0.0  ;;  %vm1051_vm1 = vcmp.eq.s32.totalorder %v6022_v38, %v4441_v30 }
 0x2fa   : > { %1449 = vadd.xlane.f32.xlu1 %v1268_v14  ;;  %1483 = vadd.xlane.f32.xlu0 %v1285_v15  ;;  %v1288_v14 = vsel %vm1070_vm2, %v4901_v29, 0.0  ;;  %v4978_v15 = vpop.permute.xlu1 %975  ;;  %vm1076_vm2 = vcmp.eq.s32.totalorder %v4610_v32, %v4441_v30 }
 0x2fb   : > { %6006 = vst [vmem:[#allocation13_spill] sm:$0xff] %v4978_v15  ;;  %v2534_v15 = vadd.s32 4294967248, %v4441_v30 }
 0x2fd   : > { %v5248_v26 = vsub.s32 %v2534_v15, %v4383_v3 }
 0x2fe   : > { %1453 = vadd.xlane.f32.xlu1 %v1270_v10  ;;  %1485 = vadd.xlane.f32.xlu0 %v1286_v23  ;;  %v6009_v10 = vld [vmem:[#allocation40_spill] sm:$0xff]  ;;  %v1276_v23 = vsel %vm1058_vm3, %v4922_v18, 0.0  ;;  %v4996_v48 = vpop.permute.xlu1 %983 }
 0x2ff   : > { %vm1071_vm4 = vcmp.eq.s32.totalorder %v6009_v10, %v4441_v30  ;;  %6013 = vst [vmem:[#allocation30_spill] sm:$0xff] %v4996_v48  ;;  %v1172_v10 = vcombine.high %v4614_v9, %v4614_v9 }
 0x300   : > { %v1289_v25 = vsel %vm1071_vm4, %v4901_v29, 0.0  ;;  %vm1090_vm4 = vcmp.eq.s32.totalorder %v4804_v50, %v4441_v30 }
 0x302   : > { %1457 = vadd.xlane.f32.xlu1 %v1272_v27  ;;  %1487 = vadd.xlane.f32.xlu0 %v1287_v46  ;;  %v6011_v27 = vld [vmem:[#allocation41_spill] sm:$0xff]  ;;  %v4994_v46 = vrot.slane %v4634_v36, %v4387_v4  ;;  %v5010_v24 = vpop.permute.xlu1 %991 }
 0x303   : > { %vm1072_vm6 = vcmp.eq.s32.totalorder %v6011_v27, %v4441_v30  ;;  %6016 = vst [vmem:[#allocation32_spill] sm:$0xff] %v5010_v24 }
 0x304   : > { %6012 = vst [vmem:[#allocation31_spill] sm:$0xff] %v4994_v46  ;;  %v1297_v9 = vsel %vm1079_vm9, %v4994_v46, 0.0  ;;  %vm1084_vm9 = vcmp.eq.s32.totalorder %v4782_v34, %v4441_v30 }
 0x306   : > { %1461 = vadd.xlane.f32.xlu1 %v1274_v56  ;;  %1489 = vadd.xlane.f32.xlu0 %v1288_v14  ;;  %v4999_v56 = vpop.permute.xlu0 %987  ;;  %v1290_v14 = vsel %vm1072_vm6, %v4901_v29, 0.0  ;;  %vm1093_vm6 = vcmp.eq.s32.totalorder %v4810_v13, %v4441_v30 }
 0x307   : > { %6014 = vst [vmem:[#allocation33_spill] sm:$0xff] %v4999_v56 }
 0x30a   : > { %1465 = vadd.xlane.f32.xlu1 %v1276_v23  ;;  %1491 = vadd.xlane.f32.xlu0 %v1289_v25  ;;  %v1295_v23 = vsel %vm1077_vm7, %v4994_v46, 0.0  ;;  %v1291_v25 = vsel %vm1073_vm8, %v4901_v29, 0.0  ;;  %v5014_v27 = vpop.permute.xlu0 %995  ;;  %vm1082_vm7 = vcmp.eq.s32.totalorder %v4769_v33, %v4441_v30  ;;  %vm1083_vm8 = vcmp.eq.s32.totalorder %v4778_v7, %v4441_v30 }
 0x30b   : > { %6017 = vst [vmem:[#allocation15_spill] sm:$0xff] %v5014_v27  ;;  %v6025_v27 = vld [vmem:[#allocation26_spill] sm:$0xff]  ;;  %v1300_v24 = vsel %vm1082_vm7, %v4994_v46, 0.0  ;;  %v1267_v33 = vsel %vm1049_vm0, %v4922_v18, 0.0  ;;  %v1269_v7 = vsel %vm1051_vm1, %v4922_v18, 0.0  ;;  %vm6028_vm0 = vcmp.eq.s32.totalorder %v4798_v12, %v4441_v30 }
 0x30c   : > { %vm6029_vm1 = vcmp.eq.s32.totalorder %v6025_v27, %v4441_v30  ;;  %vm6031_vm7 = vcmp.eq.s32.totalorder %v4802_v51, %v4441_v30  ;;  %v2499_v27 = vadd.s32 4294967288, %v4441_v30 }
 0x30e   : > { %1469 = vadd.xlane.f32.xlu1 %v1278_v54  ;;  %1493 = vadd.xlane.f32.xlu0 %v1290_v14  ;;  %v5019_v54 = vrot.slane %v1172_v10, %v4387_v4  ;;  %v1292_v14 = vsel %vm1074_vm10, %v4901_v29, 0.0  ;;  %vm1085_vm10 = vcmp.eq.s32.totalorder %v4792_v58, %v4441_v30 }
 0x310   : > { %v1312_v37 = vsel %vm1094_vm11, %v5019_v54, 0.0  ;;  %vm1086_vm11 = vcmp.eq.s32.totalorder %v4795_v11, %v4441_v30  ;;  %v5153_v11 = vsel %vm6029_vm1, %v4922_v18, 0.0  ;;  %vm1097_vm1 = vcmp.eq.s32.totalorder %v4824_v53, %v4441_v30 }
 0x312   : > { %1503 = vadd.xlane.f32.xlu1 %v1295_v23  ;;  %1495 = vadd.xlane.f32.xlu0 %v1291_v25 }
 0x316   : > { %1507 = vadd.xlane.f32.xlu1 %v1297_v9  ;;  %1497 = vadd.xlane.f32.xlu0 %v1292_v14  ;;  %v6019_v9 = vld [vmem:[#allocation14_spill] sm:$0xff]  ;;  %v6020_v14 = vld [vmem:[#allocation16_spill] sm:$0xff] }
 0x317   : > { %v1344_v57 = vpop.xlane.xlu1 %1343  ;;  %v1346_v45 = vpop.xlane.xlu0 %1345  ;;  %vm1045_vm14 = vcmp.eq.s32.totalorder %v6019_v9, %v4441_v30  ;;  %vm1047_vm15 = vcmp.eq.s32.totalorder %v6020_v14, %v4441_v30  ;;  %v1302_v14 = vsel %vm1084_vm9, %v4994_v46, 0.0  ;;  %vm2525_vm9 = vcmask 326912  }
 0x318   : > { %v3310_v23 = vmul.f32 -1.442695, %v1344_v57  ;;  %v3311_v25 = vmul.f32 -1.442695, %v1346_v45  ;;  %v1265_v5 = vsel %vm1047_vm15, %v4922_v18, 0.0 }
 0x31a   : > { %3584 = vpow2.f32 %v3310_v23  ;;  %1537 = vadd.xlane.f32.xlu1 %v1312_v37  ;;  %1499 = vadd.xlane.f32.xlu0 %v1293_v39  ;;  %v6023_v37 = vld [vmem:[#allocation22_spill] sm:$0xff]  ;;  %v6024_v39 = vld [vmem:[#allocation24_spill] sm:$0xff] }
 0x31b   : > { %3586 = vpow2.f32 %v3311_v25  ;;  %v1350_v10 = vpop.xlane.xlu1 %1349  ;;  %v1348_v45 = vpop.xlane.xlu0 %1347  ;;  %v1313_v25 = vsel %vm1095_vm13, %v5019_v54, 0.0  ;;  %vm1053_vm3 = vcmp.eq.s32.totalorder %v6023_v37, %v4441_v30  ;;  %vm1091_vm13 = vcmp.eq.s32.totalorder %v4806_v8, %v4441_v30 }
 0x31c   : > { %v3313_v57 = vmul.f32 -1.442695, %v1350_v10  ;;  %v3312_v23 = vmul.f32 -1.442695, %v1348_v45  ;;  %v1294_v10 = vsel %vm1076_vm2, %v4901_v29, 0.0  ;;  %v6026_v45 = vld [vmem:[#allocation28_spill] sm:$0xff]  ;;  %vm1088_vm2 = vcmp.eq.s32.totalorder %v4800_v1, %v4441_v30 }
 0x31d   : > { %v5129_v34 = vsel %vm1053_vm3, %v4922_v18, 0.0  ;;  %vm6027_vm15 = vcmp.eq.s32.totalorder %v6024_v39, %v4441_v30  ;;  %v5147_v37 = vsel %vm6028_vm0, %v4994_v46, 0.0  ;;  %vm6030_vm3 = vcmp.eq.s32.totalorder %v6026_v45, %v4441_v30 }
 0x31e   : > { %3588 = vpow2.f32 %v3313_v57  ;;  %1539 = vadd.xlane.f32.xlu1 %v1313_v25  ;;  %1501 = vadd.xlane.f32.xlu0 %v1294_v10  ;;  %v1299_v25 = vsel %vm1081_vm5, %v4994_v46, 0.0  ;;  %v1263_v10 = vsel %vm1045_vm14, %v4922_v18, 0.0  ;;  %vm1107_vm5 = vcmp.eq.s32.totalorder %v4891_v44, %v4441_v30 }
 0x31f   : > { %3590 = vpow2.f32 %v3312_v23  ;;  %v1354_v32 = vpop.xlane.xlu1 %1353  ;;  %v1352_v57 = vpop.xlane.xlu0 %1351  ;;  %vm1080_vm14 = vcmp.eq.s32.totalorder %v4720_v42, %v4441_v30  ;;  %v5141_v58 = vsel %vm6027_vm15, %v4922_v18, 0.0  ;;  %v5165_v12 = vsel %vm6030_vm3, %v4922_v18, 0.0 }
 0x320   : > { %v3315_v29 = vmul.f32 -1.442695, %v1354_v32  ;;  %v3314_v23 = vmul.f32 -1.442695, %v1352_v57  ;;  %v5089_v32 = vsub.s32 %v4441_v30, %v4383_v3  ;;  %v5184_v18 = vsel %vm1090_vm4, %v4994_v46, 0.0 }
 0x321   : > { %v2513_v45 = vadd.s32 4294967272, %v4441_v30  ;;  %v5197_v50 = vsel %vm1091_vm13, %v4994_v46, 0.0  ;;  %v5204_v13 = vsel %vm1080_vm14, %v4994_v46, 0.0  ;;  %vm2504_vm4 = vcmask 130112  }
 0x322   : > { %3592 = vpow2.f32 %v3315_v29  ;;  %1511 = vadd.xlane.f32.xlu1 %v1299_v25  ;;  %1439 = vadd.xlane.f32.xlu0 %v1263_v10  ;;  %vm2553_vm13 = vcmask 589312   ;;  %vm1096_vm14 = vcmp.eq.s32.totalorder %v4816_v41, %v4441_v30  ;;  %vm2574_vm15 = vcmask 786112  }
 0x323   : > { %3594 = vpow2.f32 %v3314_v23  ;;  %v1358_v57 = vpop.xlane.xlu1 %1357  ;;  %v1356_v9 = vpop.xlane.xlu0 %1355  ;;  %v1301_v23 = vsel %vm1083_vm8, %v4994_v46, 0.0  ;;  %vm2518_vm8 = vcmask 261312   ;;  %vm1108_vm0 = vcmp.eq.s32.totalorder %v4895_v47, %v4441_v30 }
 0x324   : > { %v3585_v29 = vpop.eup %3584  ;;  %v3317_v25 = vmul.f32 -1.442695, %v1358_v57  ;;  %v3316_v56 = vmul.f32 -1.442695, %v1356_v9  ;;  %vm1110_vm3 = vcmp.eq.s32.totalorder %v4914_v17, %v4441_v30 }
 0x325   : > { %v3587_v10 = vpop.eup %3586  ;;  %v1983_v57 = vadd.f32 1.0, %v3585_v29  ;;  %v5123_v29 = vsel %vm1085_vm10, %v4994_v46, 0.0  ;;  %vm2532_vm10 = vcmask 392512  }
 0x326   : > { %v1984_v48 = vadd.f32 1.0, %v3587_v10  ;;  %3596 = vpow2.f32 %v3317_v25  ;;  %1513 = vadd.xlane.f32.xlu1 %v1300_v24  ;;  %1443 = vadd.xlane.f32.xlu0 %v1265_v5  ;;  %v5135_v24 = vsel %vm1086_vm11, %v4994_v46, 0.0  ;;  %vm5937_vm11 = vcmask 458112  }
 0x327   : > { %3598 = vrcp.f32 %v1983_v57  ;;  %v1362_v35 = vpop.xlane.xlu1 %1361  ;;  %v1360_v25 = vpop.xlane.xlu0 %1359 }
 0x328   : > { %v3589_v38 = vpop.eup %3588  ;;  %3600 = vrcp.f32 %v1984_v48  ;;  %v3319_v5 = vmul.f32 -1.442695, %v1362_v35  ;;  %v3318_v10 = vmul.f32 -1.442695, %v1360_v25  ;;  %v5159_v48 = vsel %vm1088_vm2, %v4994_v46, 0.0 }
 0x329   : > { %v3591_v9 = vpop.eup %3590  ;;  %v1986_v39 = vadd.f32 1.0, %v3589_v38  ;;  %3602 = vpow2.f32 %v3316_v56  ;;  %v5171_v56 = vsel %vm6031_vm7, %v4994_v46, 0.0  ;;  %vm5933_vm2 = vcmask 654912  }
 0x32a   : > { %v1985_v57 = vadd.f32 1.0, %v3591_v9  ;;  %3604 = vpow2.f32 %v3319_v5  ;;  %1515 = vadd.xlane.f32.xlu1 %v1301_v23  ;;  %1447 = vadd.xlane.f32.xlu0 %v1267_v33  ;;  %v5178_v23 = vsel %vm1078_vm12, %v4994_v46, 0.0  ;;  %v5191_v33 = vsel %vm1093_vm6, %v5019_v54, 0.0 }
 0x32b   : > { %3606 = vrcp.f32 %v1986_v39  ;;  %v1366_v1 = vpop.xlane.xlu1 %1365  ;;  %v1364_v38 = vpop.xlane.xlu0 %1363  ;;  %v2506_v9 = vadd.s32 4294967280, %v4441_v30  ;;  %vm2511_vm6 = vcmask 195712   ;;  %v2520_v46 = vadd.s32 4294967264, %v4441_v30 }
 0x32c   : > { %v3593_v51 = vpop.eup %3592  ;;  %3608 = vrcp.f32 %v1985_v57  ;;  %v3321_v35 = vmul.f32 -1.442695, %v1366_v1  ;;  %v3320_v25 = vmul.f32 -1.442695, %v1364_v38  ;;  %v5213_v57 = vsel %vm1107_vm5, %v5019_v54, 0.0 }
 0x32d   : > { %v3595_v52 = vpop.eup %3594  ;;  %v1988_v5 = vadd.f32 1.0, %v3593_v51  ;;  %3610 = vpow2.f32 %v3318_v10  ;;  %v5207_v10 = vsub.s32 %v2499_v27, %v4383_v3  ;;  %v5216_v1 = vsub.s32 %v2513_v45, %v4383_v3 }
 0x32e   : > { %v1987_v39 = vadd.f32 1.0, %v3595_v52  ;;  %3612 = vpow2.f32 %v3321_v35  ;;  %1517 = vadd.xlane.f32.xlu1 %v1302_v14  ;;  %1451 = vadd.xlane.f32.xlu0 %v1269_v7  ;;  %v2527_v35 = vadd.s32 4294967256, %v4441_v30  ;;  %v5221_v44 = vsub.s32 %v2506_v9, %v4383_v3 }
 0x32f   : > { %3614 = vrcp.f32 %v1988_v5  ;;  %v1370_v8 = vpop.xlane.xlu1 %1369  ;;  %v1368_v51 = vpop.xlane.xlu0 %1367  ;;  %vm5936_vm12 = vcmask 523712   ;;  %vm2567_vm5 = vcmask 720512   ;;  %vm5934_vm7 = vcmask 851712  }
 0x330   : > { %v3597_v14 = vpop.eup %3596  ;;  %3616 = vrcp.f32 %v1987_v39  ;;  %v3323_v42 = vmul.f32 -1.442695, %v1370_v8  ;;  %v3322_v7 = vmul.f32 -1.442695, %v1368_v51  ;;  %v2541_v8 = vadd.s32 4294967240, %v4441_v30 }
 0x331   : > { %v3599_v27 = vpop.eup %3598  ;;  %v1990_v38 = vadd.f32 1.0, %v3597_v14  ;;  %3618 = vpow2.f32 %v3320_v25 }
 0x332   : > { %v3601_v52 = vpop.eup %3600  ;;  %v2498_v5 = vrot.slane %v3599_v27, %v5089_v32  ;;  %3620 = vpow2.f32 %v3323_v42  ;;  %1519 = vadd.xlane.f32.xlu1 %v5123_v29  ;;  %1455 = vadd.xlane.f32.xlu0 %v5129_v34  ;;  %v5230_v29 = vsub.s32 %v2527_v35, %v4383_v3  ;;  %v5234_v34 = vsub.s32 %v2520_v46, %v4383_v3 }
 0x333   : > { %v3603_v45 = vpop.eup %3602  ;;  %v2503_v39 = vrot.slane %v3601_v52, %v5207_v10  ;;  %3622 = vrcp.f32 %v1990_v38  ;;  %v1374_v25 = vpop.xlane.xlu1 %1373  ;;  %v2555_v46 = vadd.s32 4294967224, %v4441_v30 }
 0x334   : > { %v3605_v14 = vpop.eup %3604  ;;  %v1989_v51 = vadd.f32 1.0, %v3603_v45  ;;  %3624 = vpow2.f32 %v3322_v7  ;;  %v3325_v9 = vmul.f32 -1.442695, %v1374_v25  ;;  %v1372_v27 = vpop.xlane.xlu0 %1371 }
 0x335   : > { %v3607_v21 = vpop.eup %3606  ;;  %v2505_v42 = vsel %vm2504_vm4, %v2503_v39, %v2498_v5  ;;  %v1992_v52 = vadd.f32 1.0, %v3605_v14  ;;  %v3324_v31 = vmul.f32 -1.442695, %v1372_v27  ;;  %v5240_v5 = vsub.s32 %v2541_v8, %v4383_v3 }
 0x336   : > { %v3609_v6 = vpop.eup %3608  ;;  %v2517_v38 = vrot.slane %v3607_v21, %v5216_v1  ;;  %3626 = vrcp.f32 %v1989_v51  ;;  %1521 = vadd.xlane.f32.xlu1 %v5135_v24  ;;  %1459 = vadd.xlane.f32.xlu0 %v5141_v58 }
 0x337   : > { %v3611_v7 = vpop.eup %3610  ;;  %v2510_v45 = vrot.slane %v3609_v6, %v5221_v44  ;;  %3628 = vrcp.f32 %v1992_v52  ;;  %v1378_v35 = vpop.xlane.xlu1 %1377 }
 0x338   : > { %v3613_v21 = vpop.eup %3612  ;;  %v1991_v39 = vadd.f32 1.0, %v3611_v7  ;;  %3630 = vpow2.f32 %v3325_v9  ;;  %v3327_v25 = vmul.f32 -1.442695, %v1378_v35  ;;  %v1376_v14 = vpop.xlane.xlu0 %1375  ;;  %v5255_v35 = vsub.s32 %v2555_v46, %v4383_v3 }
 0x339   : > { %v3615_v24 = vpop.eup %3614  ;;  %v2512_v51 = vsel %vm2511_vm6, %v2510_v45, %v2505_v42  ;;  %v1994_v6 = vadd.f32 1.0, %v3613_v21  ;;  %3632 = vpow2.f32 %v3324_v31  ;;  %v3326_v8 = vmul.f32 -1.442695, %v1376_v14 }
 0x33a   : > { %v3617_v27 = vpop.eup %3616  ;;  %v2531_v52 = vrot.slane %v3615_v24, %v5230_v29  ;;  %v2519_v58 = vsel %vm2518_vm8, %v2517_v38, %v2512_v51  ;;  %3634 = vrcp.f32 %v1991_v39  ;;  %1523 = vadd.xlane.f32.xlu1 %v5147_v37  ;;  %v2548_v42 = vadd.s32 4294967232, %v4441_v30  ;;  %1463 = vadd.xlane.f32.xlu0 %v5153_v11 }
 0x33b   : > { %v3619_v9 = vpop.eup %3618  ;;  %v2524_v7 = vrot.slane %v3617_v27, %v5234_v34  ;;  %3636 = vrcp.f32 %v1994_v6  ;;  %v1382_v31 = vpop.xlane.xlu1 %1381  ;;  %v2569_v14 = vadd.s32 4294967208, %v4441_v30  ;;  %v2562_v6 = vadd.s32 4294967216, %v4441_v30 }
 0x33c   : > { %v3621_v45 = vpop.eup %3620  ;;  %v1993_v15 = vadd.f32 1.0, %v3619_v9  ;;  %3638 = vpow2.f32 %v3327_v25  ;;  %v3329_v38 = vmul.f32 -1.442695, %v1382_v31  ;;  %v1380_v21 = vpop.xlane.xlu0 %1379  ;;  %v5263_v25 = vsub.s32 %v2548_v42, %v4383_v3 }
 0x33d   : > { %v3623_v37 = vpop.eup %3622  ;;  %v2526_v39 = vsel %vm2525_vm9, %v2524_v7, %v2519_v58  ;;  %v1996_v24 = vadd.f32 1.0, %v3621_v45  ;;  %3640 = vpow2.f32 %v3326_v8  ;;  %v3328_v46 = vmul.f32 -1.442695, %v1380_v21 }
 0x33e   : > { %v3625_v51 = vpop.eup %3624  ;;  %v2533_v11 = vsel %vm2532_vm10, %v2531_v52, %v2526_v39  ;;  %3642 = vrcp.f32 %v1993_v15  ;;  %1525 = vadd.xlane.f32.xlu1 %v5159_v48  ;;  %1467 = vadd.xlane.f32.xlu0 %v5165_v12  ;;  %v2545_v8 = vrot.slane %v3623_v37, %v5240_v5  ;;  %v5269_v48 = vsub.s32 %v2569_v14, %v4383_v3 }
 0x33f   : > { %3644 = vrcp.f32 %v1996_v24  ;;  %v1995_v27 = vadd.f32 1.0, %v3625_v51  ;;  %v1386_v58 = vpop.xlane.xlu1 %1385  ;;  %v5274_v12 = vsub.s32 %v2562_v6, %v4383_v3  ;;  %v2583_v21 = vadd.s32 4294967192, %v4441_v30 }
 0x340   : > { %v3627_v9 = vpop.eup %3626  ;;  %3646 = vpow2.f32 %v3329_v38  ;;  %v3331_v52 = vmul.f32 -1.442695, %v1386_v58  ;;  %v1384_v7 = vpop.xlane.xlu0 %1383  ;;  %v2576_v38 = vadd.s32 4294967200, %v4441_v30 }
 0x341   : > { %v3629_v31 = vpop.eup %3628  ;;  %v2538_v45 = vrot.slane %v3627_v9, %v5248_v26  ;;  %3648 = vrcp.f32 %v1995_v27  ;;  %v3330_v42 = vmul.f32 -1.442695, %v1384_v7 }
 0x342   : > { %v3631_v15 = vpop.eup %3630  ;;  %3650 = vpow2.f32 %v3328_v46  ;;  %1527 = vadd.xlane.f32.xlu1 %v5171_v56  ;;  %v2559_v14 = vrot.slane %v3629_v31, %v5255_v35  ;;  %1505 = vadd.xlane.f32.xlu0 %v5178_v23  ;;  %v5287_v23 = vsub.s32 %v2583_v21, %v4383_v3 }
 0x343   : > { %v3633_v37 = vpop.eup %3632  ;;  %v2540_v39 = vsel %vm5937_vm11, %v2538_v45, %v2533_v11  ;;  %v1998_v24 = vadd.f32 1.0, %v3631_v15  ;;  %3652 = vpow2.f32 %v3331_v52  ;;  %v1390_v51 = vpop.xlane.xlu1 %1389  ;;  %v5290_v52 = vsub.s32 %v2576_v38, %v4383_v3 }
 0x344   : > { %v3635_v27 = vpop.eup %3634  ;;  %v2547_v6 = vsel %vm5936_vm12, %v2545_v8, %v2540_v39  ;;  %v1997_v58 = vadd.f32 1.0, %v3633_v37  ;;  %3654 = vpow2.f32 %v3330_v42  ;;  %v3333_v9 = vmul.f32 -1.442695, %v1390_v51  ;;  %v1388_v7 = vpop.xlane.xlu0 %1387 }
 0x345   : > { %v3637_v46 = vpop.eup %3636  ;;  %v2552_v56 = vrot.slane %v3635_v27, %v5263_v25  ;;  %3656 = vrcp.f32 %v1998_v24  ;;  %v3332_v11 = vmul.f32 -1.442695, %v1388_v7  ;;  %v2597_v8 = vadd.s32 4294967176, %v4441_v30 }
 0x346   : > { %v3639_v45 = vpop.eup %3638  ;;  %3658 = vrcp.f32 %v1997_v58  ;;  %1529 = vadd.xlane.f32.xlu1 %v5184_v18  ;;  %v2573_v15 = vrot.slane %v3637_v46, %v5269_v48  ;;  %1535 = vadd.xlane.f32.xlu0 %v5191_v33  ;;  %v2590_v7 = vadd.s32 4294967184, %v4441_v30 }
 0x347   : > { %v3641_v31 = vpop.eup %3640  ;;  %v2554_v42 = vsel %vm2553_vm13, %v2552_v56, %v2547_v6  ;;  %v2000_v37 = vadd.f32 1.0, %v3639_v45  ;;  %3660 = vpow2.f32 %v3333_v9  ;;  %v1394_v21 = vpop.xlane.xlu1 %1393  ;;  %v5305_v33 = vsub.s32 %v2597_v8, %v4383_v3 }
 0x348   : > { %v3643_v38 = vpop.eup %3642  ;;  %v2561_v39 = vsel %vm5933_vm2, %v2559_v14, %v2554_v42  ;;  %v1999_v24 = vadd.f32 1.0, %v3641_v31  ;;  %3662 = vpow2.f32 %v3332_v11  ;;  %v3335_v51 = vmul.f32 -1.442695, %v1394_v21  ;;  %v1392_v18 = vpop.xlane.xlu0 %1391 }
 0x349   : > { %v3645_v27 = vpop.eup %3644  ;;  %v2566_v58 = vrot.slane %v3643_v38, %v5274_v12  ;;  %3664 = vrcp.f32 %v2000_v37  ;;  %v3334_v6 = vmul.f32 -1.442695, %v1392_v18  ;;  %vm5935_vm2 = vcmask 917312  }
 0x34a   : > { %v3647_v46 = vpop.eup %3646  ;;  %3666 = vrcp.f32 %v1999_v24  ;;  %1531 = vadd.xlane.f32.xlu1 %v5197_v50  ;;  %v2587_v56 = vrot.slane %v3645_v27, %v5287_v23  ;;  %1509 = vadd.xlane.f32.xlu0 %v5204_v13  ;;  %v5314_v50 = vsub.s32 %v2590_v7, %v4383_v3  ;;  %v1314_v13 = vsel %vm1096_vm14, %v5019_v54, 0.0 }
 0x34b   : > { %v3649_v14 = vpop.eup %3648  ;;  %v2568_v9 = vsel %vm2567_vm5, %v2566_v58, %v2561_v39  ;;  %v2002_v11 = vadd.f32 1.0, %v3647_v46  ;;  %3668 = vpow2.f32 %v3335_v51  ;;  %v1398_v45 = vpop.xlane.xlu1 %1397  ;;  %v6032_v3 = vcombine.high %v4634_v36, %v4634_v36 }
 0x34c   : > { %v3651_v31 = vpop.eup %3650  ;;  %v2575_v42 = vsel %vm2574_vm15, %v2573_v15, %v2568_v9  ;;  %v2580_v8 = vrot.slane %v3649_v14, %v5290_v52  ;;  %3670 = vpow2.f32 %v3334_v6  ;;  %v3337_v37 = vmul.f32 -1.442695, %v1398_v45  ;;  %v1396_v21 = vpop.xlane.xlu0 %1395 }
 0x34d   : > { %v3653_v38 = vpop.eup %3652  ;;  %3672 = vrcp.f32 %v2002_v11  ;;  %v2001_v39 = vadd.f32 1.0, %v3651_v31  ;;  %v3336_v18 = vmul.f32 -1.442695, %v1396_v21  ;;  %v5326_v58 = vrot.slane %v6032_v3, %v4387_v4 }
 0x34e   : > { %v3655_v24 = vpop.eup %3654  ;;  %v2582_v51 = vsel %vm5934_vm7, %v2580_v8, %v2575_v42  ;;  %v2004_v15 = vadd.f32 1.0, %v3653_v38  ;;  %3674 = vpow2.f32 %v3337_v37  ;;  %1563 = vadd.xlane.f32.xlu1 %v5213_v57  ;;  %1541 = vadd.xlane.f32.xlu0 %v1314_v13  ;;  %vm2595_vm14 = vcmask 982912  }
 0x34f   : > { %v3657_v27 = vpop.eup %3656  ;;  %v2589_v7 = vsel %vm5935_vm2, %v2587_v56, %v2582_v51  ;;  %3676 = vrcp.f32 %v2001_v39  ;;  %v2003_v41 = vadd.f32 1.0, %v3655_v24  ;;  %v1402_v6 = vpop.xlane.xlu1 %1401  ;;  %vm2602_vm7 = vcmask 1048512  }
 0x350   : > { %v3659_v46 = vpop.eup %3658  ;;  %v2601_v14 = vrot.slane %v3657_v27, %v5305_v33  ;;  %3678 = vrcp.f32 %v2004_v15  ;;  %v3339_v9 = vmul.f32 -1.442695, %v1402_v6  ;;  %v1400_v57 = vpop.xlane.xlu0 %1399  ;;  %v1326_v4 = vsel %vm1108_vm0, %v5019_v54, 0.0 }
 0x351   : > { %v3661_v11 = vpop.eup %3660  ;;  %v2594_v45 = vrot.slane %v3659_v46, %v5314_v50  ;;  %3680 = vrcp.f32 %v2003_v41  ;;  %v3338_v31 = vmul.f32 -1.442695, %v1400_v57  ;;  %v1315_v42 = vsel %vm1097_vm1, %v5019_v54, 0.0 }
 0x352   : > { %v3663_v36 = vpop.eup %3662  ;;  %v2006_v56 = vadd.f32 1.0, %v3661_v11  ;;  %3682 = vpow2.f32 %v3336_v18  ;;  %1565 = vadd.xlane.f32.xlu1 %v1326_v4  ;;  %vm1098_vm2 = vcmp.eq.s32.totalorder %v4830_v60, %v4441_v30  ;;  %1543 = vadd.xlane.f32.xlu0 %v1315_v42  ;;  %vm1111_vm0 = vcmp.eq.s32.totalorder %v4926_v20, %v4441_v30 }
 0x353   : > { %v3665_v8 = vpop.eup %3664  ;;  %v2596_v37 = vsel %vm2595_vm14, %v2594_v45, %v2589_v7  ;;  %v2005_v21 = vadd.f32 1.0, %v3663_v36  ;;  %3684 = vpow2.f32 %v3339_v9  ;;  %v1406_v47 = vpop.xlane.xlu1 %1405  ;;  %v1328_v18 = vsel %vm1110_vm3, %v5326_v58, 0.0 }
 0x354   : > { %v3667_v38 = vpop.eup %3666  ;;  %v5343_v39 = vsel %vm2602_vm7, %v2601_v14, %v2596_v37  ;;  %v2611_v13 = vrot.slane %v3665_v8, %v5207_v10  ;;  %3686 = vrcp.f32 %v2006_v56  ;;  %v3341_v24 = vmul.f32 -1.442695, %v1406_v47  ;;  %v1404_v53 = vpop.xlane.xlu0 %1403 }
 0x355   : > { %v3669_v51 = vpop.eup %3668  ;;  %v2607_v15 = vrot.slane %v3667_v38, %v5089_v32  ;;  %3688 = vrcp.f32 %v2005_v21  ;;  %v3340_v7 = vmul.f32 -1.442695, %v1404_v53  ;;  %v1316_v41 = vsel %vm1098_vm2, %v5019_v54, 0.0 }
 0x356   : > { %v3671_v27 = vpop.eup %3670  ;;  %v2008_v3 = vadd.f32 1.0, %v3669_v51  ;;  %3690 = vpow2.f32 %v3338_v31  ;;  %1569 = vadd.xlane.f32.xlu1 %v1328_v18  ;;  %vm1099_vm1 = vcmp.eq.s32.totalorder %v4839_v59, %v4441_v30  ;;  %1545 = vadd.xlane.f32.xlu0 %v1316_v41  ;;  %vm1112_vm3 = vcmp.eq.s32.totalorder %v4930_v22, %v4441_v30 }
 0x357   : > { %v3673_v6 = vpop.eup %3672  ;;  %v2612_v46 = vsel %vm2504_vm4, %v2611_v13, %v2607_v15  ;;  %v2007_v14 = vadd.f32 1.0, %v3671_v27  ;;  %3692 = vpow2.f32 %v3341_v24  ;;  %v1410_v17 = vpop.xlane.xlu1 %1409  ;;  %v1329_v60 = vsel %vm1111_vm0, %v5326_v58, 0.0 }
 0x358   : > { %v3675_v9 = vpop.eup %3674  ;;  %3694 = vrcp.f32 %v2008_v3  ;;  %v3343_v57 = vmul.f32 -1.442695, %v1410_v17  ;;  %v1408_v11 = vpop.xlane.xlu0 %1407  ;;  %v2621_v4 = vrot.slane %v3673_v6, %v5216_v1  ;;  %vm1100_vm2 = vcmp.eq.s32.totalorder %v4843_v62, %v4441_v30 }
 0x359   : > { %v3677_v45 = vpop.eup %3676  ;;  %3696 = vrcp.f32 %v2007_v14  ;;  %v2010_v36 = vadd.f32 1.0, %v3675_v9  ;;  %v3342_v56 = vmul.f32 -1.442695, %v1408_v11  ;;  %v1317_v20 = vsel %vm1099_vm1, %v5019_v54, 0.0 }
 0x35a   : > { %v3679_v31 = vpop.eup %3678  ;;  %v2616_v42 = vrot.slane %v3677_v45, %v5221_v44  ;;  %3698 = vpow2.f32 %v3340_v7  ;;  %1571 = vadd.xlane.f32.xlu1 %v1329_v60  ;;  %vm1113_vm0 = vcmp.eq.s32.totalorder %v4940_v43, %v4441_v30  ;;  %1547 = vadd.xlane.f32.xlu0 %v1317_v20  ;;  %v1330_v47 = vsel %vm1112_vm3, %v5326_v58, 0.0 }
 0x35b   : > { %v3681_v8 = vpop.eup %3680  ;;  %v2631_v37 = vrot.slane %v3679_v31, %v5230_v29  ;;  %3700 = vrcp.f32 %v2010_v36  ;;  %v1414_v21 = vpop.xlane.xlu1 %1413  ;;  %v1318_v22 = vsel %vm1100_vm2, %v5019_v54, 0.0  ;;  %vm1101_vm1 = vcmp.eq.s32.totalorder %v4853_v55, %v4441_v30 }
 0x35c   : > { %v3683_v38 = vpop.eup %3682  ;;  %v2617_v13 = vsel %vm2511_vm6, %v2616_v42, %v2612_v46  ;;  %v2626_v59 = vrot.slane %v3681_v8, %v5234_v34  ;;  %3702 = vpow2.f32 %v3343_v57  ;;  %v3345_v24 = vmul.f32 -1.442695, %v1414_v21  ;;  %v1412_v53 = vpop.xlane.xlu0 %1411 }
 0x35d   : > { %v3685_v51 = vpop.eup %3684  ;;  %v2622_v15 = vsel %vm2518_vm8, %v2621_v4, %v2617_v13  ;;  %v2009_v18 = vadd.f32 1.0, %v3683_v38  ;;  %3704 = vpow2.f32 %v3342_v56  ;;  %v3344_v27 = vmul.f32 -1.442695, %v1412_v53 }
 0x35e   : > { %v3687_v3 = vpop.eup %3686  ;;  %v2627_v7 = vsel %vm2525_vm9, %v2626_v59, %v2622_v15  ;;  %v2012_v41 = vadd.f32 1.0, %v3685_v51  ;;  %3706 = vpow2.f32 %v3345_v24  ;;  %1573 = vadd.xlane.f32.xlu1 %v1330_v47  ;;  %1549 = vadd.xlane.f32.xlu0 %v1318_v22  ;;  %vm1114_vm3 = vcmp.eq.s32.totalorder %v4943_v49, %v4441_v30 }
 0x35f   : > { %v3689_v6 = vpop.eup %3688  ;;  %v2641_v46 = vrot.slane %v3687_v3, %v5240_v5  ;;  %v2632_v14 = vsel %vm2532_vm10, %v2631_v37, %v2627_v7  ;;  %3708 = vrcp.f32 %v2009_v18  ;;  %v1418_v17 = vpop.xlane.xlu1 %1417  ;;  %v1331_v36 = vsel %vm1113_vm0, %v5326_v58, 0.0 }
 0x360   : > { %v3691_v9 = vpop.eup %3690  ;;  %v2636_v57 = vrot.slane %v3689_v6, %v5248_v26  ;;  %3710 = vrcp.f32 %v2012_v41  ;;  %v3347_v62 = vmul.f32 -1.442695, %v1418_v17  ;;  %v1416_v11 = vpop.xlane.xlu0 %1415  ;;  %v1319_v20 = vsel %vm1101_vm1, %v5019_v54, 0.0 }
 0x361   : > { %v3693_v60 = vpop.eup %3692  ;;  %v2011_v45 = vadd.f32 1.0, %v3691_v9  ;;  %3712 = vpow2.f32 %v3344_v27  ;;  %v3346_v4 = vmul.f32 -1.442695, %v1416_v11  ;;  %vm1102_vm2 = vcmp.eq.s32.totalorder %v4856_v61, %v4441_v30 }
 0x362   : > { %v3695_v56 = vpop.eup %3694  ;;  %v2637_v31 = vsel %vm5937_vm11, %v2636_v57, %v2632_v14  ;;  %v2014_v42 = vadd.f32 1.0, %v3693_v60  ;;  %3714 = vpow2.f32 %v3347_v62  ;;  %1575 = vadd.xlane.f32.xlu1 %v1331_v36  ;;  %1551 = vadd.xlane.f32.xlu0 %v1319_v20  ;;  %vm1115_vm0 = vcmp.eq.s32.totalorder %v4952_v16, %v4441_v30 }
 0x363   : > { %v3697_v8 = vpop.eup %3696  ;;  %v2651_v37 = vrot.slane %v3695_v56, %v5255_v35  ;;  %v2642_v43 = vsel %vm5936_vm12, %v2641_v46, %v2637_v31  ;;  %3716 = vrcp.f32 %v2011_v45  ;;  %v1422_v21 = vpop.xlane.xlu1 %1421  ;;  %v1332_v51 = vsel %vm1114_vm3, %v5326_v58, 0.0 }
 0x364   : > { %v3699_v47 = vpop.eup %3698  ;;  %v2646_v38 = vrot.slane %v3697_v8, %v5263_v25  ;;  %3718 = vrcp.f32 %v2014_v42  ;;  %v3349_v55 = vmul.f32 -1.442695, %v1422_v21  ;;  %v1420_v13 = vpop.xlane.xlu0 %1419  ;;  %vm1103_vm1 = vcmp.eq.s32.totalorder %v4865_v0, %v4441_v30 }
 0x365   : > { %v3701_v59 = vpop.eup %3700  ;;  %v2013_v24 = vadd.f32 1.0, %v3699_v47  ;;  %3720 = vpow2.f32 %v3346_v4  ;;  %v3348_v53 = vmul.f32 -1.442695, %v1420_v13  ;;  %v1320_v27 = vsel %vm1102_vm2, %v5019_v54, 0.0 }
 0x366   : > { %v3703_v15 = vpop.eup %3702  ;;  %v2647_v18 = vsel %vm2553_vm13, %v2646_v38, %v2642_v43  ;;  %3722 = vpow2.f32 %v3349_v55  ;;  %1577 = vadd.xlane.f32.xlu1 %v1332_v51  ;;  %vm1116_vm12 = vcmp.eq.s32.totalorder %v4956_v19, %v4441_v30  ;;  %vm6033_vm11 = vcmask 654912   ;;  %1553 = vadd.xlane.f32.xlu0 %v1320_v27 }
 0x367   : > { %v3705_v3 = vpop.eup %3704  ;;  %v2652_v49 = vsel %vm6033_vm11, %v2651_v37, %v2647_v18  ;;  %3724 = vrcp.f32 %v2013_v24  ;;  %v2016_v7 = vadd.f32 1.0, %v3703_v15  ;;  %v1426_v41 = vpop.xlane.xlu1 %1425  ;;  %v1333_v61 = vsel %vm1115_vm0, %v5326_v58, 0.0 }
 0x368   : > { %v3707_v22 = vpop.eup %3706  ;;  %v2015_v6 = vadd.f32 1.0, %v3705_v3  ;;  %3726 = vpow2.f32 %v3348_v53  ;;  %v3351_v46 = vmul.f32 -1.442695, %v1426_v41  ;;  %v1424_v14 = vpop.xlane.xlu0 %1423  ;;  %v2661_v9 = vrot.slane %v3701_v59, %v5269_v48  ;;  %v6034_v59 = vld [vmem:[#allocation11_spill] sm:$0xff] }
 0x369   : > { %v3709_v17 = vpop.eup %3708  ;;  %3728 = vrcp.f32 %v2016_v7  ;;  %v2018_v57 = vadd.f32 1.0, %v3707_v22  ;;  %v3350_v62 = vmul.f32 -1.442695, %v1424_v14  ;;  %vm1104_vm11 = vcmp.eq.s32.totalorder %v4869_v63, %v4441_v30 }
 0x36a   : > { %v3711_v11 = vpop.eup %3710  ;;  %v2656_v60 = vrot.slane %v3709_v17, %v5274_v12  ;;  %3730 = vrcp.f32 %v2015_v6  ;;  %1579 = vadd.xlane.f32.xlu1 %v1333_v61  ;;  %v1321_v16 = vsel %vm1103_vm1, %v5019_v54, 0.0  ;;  %vm1117_vm3 = vcmp.eq.s32.totalorder %v4966_v40, %v4441_v30 }
 0x36b   : > { %v3713_v45 = vpop.eup %3712  ;;  %v2671_v4 = vrot.slane %v3711_v11, %v5287_v23  ;;  %3732 = vrcp.f32 %v2018_v57  ;;  %1555 = vadd.xlane.f32.xlu0 %v1321_v16  ;;  %v1430_v36 = vpop.xlane.xlu1 %1429  ;;  %v1334_v56 = vsel %vm1116_vm12, %v5326_v58, 0.0  ;;  %vm1105_vm2 = vcmp.eq.s32.totalorder %v4879_v2, %v4441_v30 }
 0x36c   : > { %v3715_v31 = vpop.eup %3714  ;;  %v2657_v42 = vsel %vm2567_vm5, %v2656_v60, %v2652_v49  ;;  %v2017_v20 = vadd.f32 1.0, %v3713_v45  ;;  %3734 = vpow2.f32 %v3351_v46  ;;  %v3353_v0 = vmul.f32 -1.442695, %v1430_v36  ;;  %v1428_v8 = vpop.xlane.xlu0 %1427 }
 0x36d   : > { %v3717_v37 = vpop.eup %3716  ;;  %v2662_v43 = vsel %vm2574_vm15, %v2661_v9, %v2657_v42  ;;  %v2020_v21 = vadd.f32 1.0, %v3715_v31  ;;  %3736 = vpow2.f32 %v3350_v62  ;;  %v3352_v47 = vmul.f32 -1.442695, %v1428_v8  ;;  %v6037_v31 = vld [vmem:[#allocation13_spill] sm:$0xff] }
 0x36e   : > { %v3719_v38 = vpop.eup %3718  ;;  %v2666_v19 = vrot.slane %v3717_v37, %v5290_v52  ;;  %3738 = vrcp.f32 %v2017_v20  ;;  %1581 = vadd.xlane.f32.xlu1 %v1334_v56  ;;  %v1322_v55 = vsel %vm1104_vm11, %v5019_v54, 0.0  ;;  %vm1109_vm12 = vcmp.eq.s32.totalorder %v4909_v28, %v4441_v30  ;;  %v6038_v8 = vld [vmem:[#allocation45_spill] sm:$0xff] }
 0x36f   : > { %v3721_v13 = vpop.eup %3720  ;;  %vm1118_vm0 = vcmp.eq.s32.totalorder %v6034_v59, %v4441_v30  ;;  %3740 = vrcp.f32 %v2020_v21  ;;  %1557 = vadd.xlane.f32.xlu0 %v1322_v55  ;;  %v1434_v24 = vpop.xlane.xlu1 %1433  ;;  %v1335_v53 = vsel %vm1117_vm3, %v5326_v58, 0.0  ;;  %vm6035_vm1 = vcmask 851712  }
 0x370   : > { %v3723_v51 = vpop.eup %3722  ;;  %v2667_v15 = vsel %vm6035_vm1, %v2666_v19, %v2662_v43  ;;  %v2019_v63 = vadd.f32 1.0, %v3721_v13  ;;  %3742 = vpow2.f32 %v3353_v0  ;;  %v3355_v18 = vmul.f32 -1.442695, %v1434_v24  ;;  %v1432_v27 = vpop.xlane.xlu0 %1431 }
 0x371   : > { %v3725_v3 = vpop.eup %3724  ;;  %v2681_v49 = vrot.slane %v3719_v38, %v5305_v33  ;;  %vm6036_vm11 = vcmask 917312   ;;  %v2022_v41 = vadd.f32 1.0, %v3723_v51  ;;  %3744 = vpow2.f32 %v3352_v47  ;;  %v6039_v51 = vld [vmem:[#allocation44_spill] sm:$0xff] }
 0x372   : > { %v2672_v7 = vsel %vm6036_vm11, %v2671_v4, %v2667_v15  ;;  %v3727_v22 = vpop.eup %3726  ;;  %v2676_v6 = vrot.slane %v3725_v3, %v5314_v50  ;;  %3746 = vrcp.f32 %v2019_v63  ;;  %v3354_v40 = vmul.f32 -1.442695, %v1432_v27  ;;  %1583 = vadd.xlane.f32.xlu1 %v1335_v53  ;;  %v6040_v15 = vld [vmem:[#allocation12_spill] sm:$0xff] }
 0x373   : > { %v1323_v46 = vsel %vm1105_vm2, %v5019_v54, 0.0  ;;  %v3729_v14 = vpop.eup %3728  ;;  %3748 = vrcp.f32 %v2022_v41  ;;  %v2021_v61 = vadd.f32 1.0, %v3727_v22  ;;  %v1438_v17 = vpop.xlane.xlu1 %1437  ;;  %v1336_v9 = vsel %vm1118_vm0, %v5326_v58, 0.0 }
 0x374   : > { %1559 = vadd.xlane.f32.xlu0 %v1323_v46  ;;  %vm3157_vm3 = vcmask 1041409   ;;  %v3731_v57 = vpop.eup %3730  ;;  %v2677_v62 = vsel %vm2595_vm14, %v2676_v6, %v2672_v7  ;;  %v2690_v11 = vrot.slane %v3729_v14, %v5207_v10  ;;  %3750 = vpow2.f32 %v3355_v18  ;;  %v1436_v2 = vpop.xlane.xlu0 %1435 }
 0x375   : > { %v3357_v60 = vmul.f32 -1.442695, %v1438_v17  ;;  %v3733_v16 = vpop.eup %3732  ;;  %v2682_v45 = vsel %vm2602_vm7, %v2681_v49, %v2677_v62  ;;  %v2686_v4 = vrot.slane %v3731_v57, %v5089_v32  ;;  %3752 = vrcp.f32 %v2021_v61  ;;  %v6041_v57 = vld [vmem:[#allocation30_spill] sm:$0xff]  ;;  %v6042_v62 = vld [vmem:[#allocation33_spill] sm:$0xff] }
 0x376   : > { %v3356_v36 = vmul.f32 -1.442695, %v1436_v2  ;;  %v3735_v56 = vpop.eup %3734  ;;  %vm1119_vm2 = vcmp.eq.s32.totalorder %v6037_v31, %v4441_v30  ;;  %3754 = vpow2.f32 %v3354_v40  ;;  %1585 = vadd.xlane.f32.xlu1 %v1336_v9  ;;  %v1327_v42 = vsel %vm1109_vm12, %v5326_v58, 0.0  ;;  %v6044_v31 = vld [vmem:[#allocation32_spill] sm:$0xff] }
 0x377   : > { %v5486_v20 = vsel %vm3157_vm3, %v2682_v45, %v5343_v39  ;;  %v3737_v0 = vpop.eup %3736  ;;  %vm1106_vm0 = vcmp.eq.s32.totalorder %v6038_v8, %v4441_v30  ;;  %v2691_v37 = vsel %vm2504_vm4, %v2690_v11, %v2686_v4  ;;  %v2024_v43 = vadd.f32 1.0, %v3735_v56  ;;  %v1474_v21 = vpop.xlane.xlu1 %1473  ;;  %v6043_v11 = vld [vmem:[#allocation31_spill] sm:$0xff] }
 0x378   : > { %3756 = vpow2.f32 %v3357_v60  ;;  %1567 = vadd.xlane.f32.xlu0 %v1327_v42  ;;  %v3739_v47 = vpop.eup %3738  ;;  %v2700_v38 = vrot.slane %v3733_v16, %v5216_v1  ;;  %v2023_v19 = vadd.f32 1.0, %v3737_v0  ;;  %v3375_v28 = vmul.f32 -1.442695, %v1474_v21  ;;  %v1472_v55 = vpop.xlane.xlu0 %1471 }
 0x379   : > { %3758 = vpow2.f32 %v3356_v36  ;;  %v3741_v13 = vpop.eup %3740  ;;  %v2695_v39 = vrot.slane %v3739_v47, %v5221_v44  ;;  %v3374_v59 = vmul.f32 -1.442695, %v1472_v55  ;;  %v1337_v24 = vsel %vm1119_vm2, %v5326_v58, 0.0 }
 0x37a   : > { %3760 = vrcp.f32 %v2024_v43  ;;  %v3743_v53 = vpop.eup %3742  ;;  %vm1092_vm12 = vcmp.eq.s32.totalorder %v6039_v51, %v4441_v30  ;;  %vm1120_vm1 = vcmp.eq.s32.totalorder %v6040_v15, %v4441_v30  ;;  %1587 = vadd.xlane.f32.xlu1 %v1337_v24  ;;  %v1324_v63 = vsel %vm1106_vm0, %v5019_v54, 0.0  ;;  %v6045_v43 = vld [vmem:[#allocation15_spill] sm:$0xff] }
 0x37b   : > { %3762 = vrcp.f32 %v2023_v19  ;;  %v3745_v18 = vpop.eup %3744  ;;  %v2696_v27 = vsel %vm2511_vm6, %v2695_v39, %v2691_v37  ;;  %v2710_v3 = vrot.slane %v3741_v13, %v5230_v29  ;;  %v2026_v49 = vadd.f32 1.0, %v3743_v53  ;;  %v1478_v7 = vpop.xlane.xlu1 %1477 }
 0x37c   : > { %3764 = vpow2.f32 %v3375_v28  ;;  %1561 = vadd.xlane.f32.xlu0 %v1324_v63  ;;  %v3747_v41 = vpop.eup %3746  ;;  %v2701_v22 = vsel %vm2518_vm8, %v2700_v38, %v2696_v27  ;;  %v2025_v6 = vadd.f32 1.0, %v3745_v18  ;;  %v3377_v40 = vmul.f32 -1.442695, %v1478_v7  ;;  %v1476_v46 = vpop.xlane.xlu0 %1475 }
 0x37d   : > { %3766 = vpow2.f32 %v3374_v59  ;;  %v3749_v14 = vpop.eup %3748  ;;  %v2705_v61 = vrot.slane %v3747_v41, %v5234_v34  ;;  %v3376_v54 = vmul.f32 -1.442695, %v1476_v46  ;;  %v1338_v17 = vsel %vm1120_vm1, %v5326_v58, 0.0 }
 0x37e   : > { %3768 = vrcp.f32 %v2026_v49  ;;  %v3751_v9 = vpop.eup %3750  ;;  %vm1121_vm11 = vcmp.eq.s32.totalorder %v6041_v57, %v4441_v30  ;;  %vm1122_vm3 = vcmp.eq.s32.totalorder %v6042_v62, %v4441_v30  ;;  %1589 = vadd.xlane.f32.xlu1 %v1338_v17  ;;  %v1310_v60 = vsel %vm1092_vm12, %v6043_v11, 0.0 }
 0x37f   : > { %3770 = vrcp.f32 %v2025_v6  ;;  %v3753_v2 = vpop.eup %3752  ;;  %v2706_v16 = vsel %vm2525_vm9, %v2705_v61, %v2701_v22  ;;  %v2720_v45 = vrot.slane %v3749_v14, %v5240_v5  ;;  %v2028_v4 = vadd.f32 1.0, %v3751_v9  ;;  %v1442_v36 = vpop.xlane.xlu1 %1441 }
 0x380   : > { %3772 = vpow2.f32 %v3377_v40  ;;  %1533 = vadd.xlane.f32.xlu0 %v1310_v60  ;;  %v3755_v56 = vpop.eup %3754  ;;  %vm1123_vm2 = vcmp.eq.s32.totalorder %v6044_v31, %v4441_v30  ;;  %v2711_v42 = vsel %vm2532_vm10, %v2710_v3, %v2706_v16  ;;  %v2715_v0 = vrot.slane %v3753_v2, %v5248_v26  ;;  %v1480_v8 = vpop.xlane.xlu0 %1479 }
 0x381   : > { %3774 = vpow2.f32 %v3376_v54  ;;  %vm1124_vm0 = vcmp.eq.s32.totalorder %v6045_v43, %v4441_v30  ;;  %v2027_v21 = vadd.f32 1.0, %v3755_v56  ;;  %v1339_v47 = vsel %vm1121_vm11, %v5326_v58, 0.0 }
 0x382   : > { %v3757_v37 = vpop.eup %3756  ;;  %3776 = vrcp.f32 %v2028_v4  ;;  %vm6046_vm12 = vcmask 458112   ;;  %v3378_v55 = vmul.f32 -1.442695, %v1480_v8  ;;  %1591 = vadd.xlane.f32.xlu1 %v1339_v47  ;;  %v1340_v13 = vsel %vm1122_vm3, %v5326_v58, 0.0 }
 0x383   : > { %v3759_v38 = vpop.eup %3758  ;;  %v2716_v19 = vsel %vm6046_vm12, %v2715_v0, %v2711_v42  ;;  %v2030_v28 = vadd.f32 1.0, %v3757_v37  ;;  %vm6047_vm1 = vcmask 523712   ;;  %3778 = vrcp.f32 %v2027_v21  ;;  %v1446_v51 = vpop.xlane.xlu1 %1445 }
 0x384   : > { %v3761_v39 = vpop.eup %3760  ;;  %v2721_v59 = vsel %vm6047_vm1, %v2720_v45, %v2716_v19  ;;  %v2029_v24 = vadd.f32 1.0, %v3759_v38  ;;  %v3359_v53 = vmul.f32 -1.442695, %v1442_v36  ;;  %1593 = vadd.xlane.f32.xlu0 %v1340_v13  ;;  %v1482_v18 = vpop.xlane.xlu0 %1481  ;;  %v1342_v49 = vsel %vm1124_vm0, %v5326_v58, 0.0 }
 0x385   : > { %v3763_v15 = vpop.eup %3762  ;;  %v2730_v63 = vrot.slane %v3761_v39, %v5255_v35  ;;  %3780 = vrcp.f32 %v2030_v28  ;;  %v3379_v22 = vmul.f32 -1.442695, %v1482_v18  ;;  %v1341_v6 = vsel %vm1123_vm2, %v5326_v58, 0.0 }
 0x386   : > { %v3765_v27 = vpop.eup %3764  ;;  %v2725_v3 = vrot.slane %v3763_v15, %v5263_v25  ;;  %3782 = vrcp.f32 %v2029_v24  ;;  %1597 = vadd.xlane.f32.xlu1 %v1342_v49  ;;  %v3361_v61 = vmul.f32 -1.442695, %v1446_v51  ;;  %vm6048_vm11 = vcmask 654912  }
 0x387   : > { %v3767_v7 = vpop.eup %3766  ;;  %v2048_v41 = vadd.f32 1.0, %v3765_v27  ;;  %3784 = vpow2.f32 %v3378_v55  ;;  %v1450_v54 = vpop.xlane.xlu1 %1449  ;;  %vm6049_vm3 = vcmask 851712   ;;  %vm3159_vm2 = vcmask 1042434  }
 0x388   : > { %v3769_v40 = vpop.eup %3768  ;;  %v2726_v46 = vsel %vm2553_vm13, %v2725_v3, %v2721_v59  ;;  %v2047_v14 = vadd.f32 1.0, %v3767_v7  ;;  %3786 = vpow2.f32 %v3359_v53  ;;  %1595 = vadd.xlane.f32.xlu0 %v1341_v6  ;;  %v1484_v62 = vpop.xlane.xlu0 %1483  ;;  %v3363_v36 = vmul.f32 -1.442695, %v1450_v54 }
 0x389   : > { %v3771_v17 = vpop.eup %3770  ;;  %v2740_v9 = vrot.slane %v3769_v40, %v5269_v48  ;;  %v2731_v57 = vsel %vm6048_vm11, %v2730_v63, %v2726_v46  ;;  %3788 = vrcp.f32 %v2048_v41  ;;  %v3380_v2 = vmul.f32 -1.442695, %v1484_v62 }
 0x38a   : > { %v3773_v11 = vpop.eup %3772  ;;  %v2735_v60 = vrot.slane %v3771_v17, %v5274_v12  ;;  %3790 = vrcp.f32 %v2047_v14  ;;  %vm6050_vm0 = vcmask 917312  }
 0x38b   : > { %v3775_v30 = vpop.eup %3774  ;;  %v2050_v58 = vadd.f32 1.0, %v3773_v11  ;;  %3792 = vpow2.f32 %v3379_v22  ;;  %v1454_v56 = vpop.xlane.xlu1 %1453 }
 0x38c   : > { %v3777_v16 = vpop.eup %3776  ;;  %v2736_v45 = vsel %vm2567_vm5, %v2735_v60, %v2731_v57  ;;  %v2049_v4 = vadd.f32 1.0, %v3775_v30  ;;  %3794 = vpow2.f32 %v3361_v61  ;;  %v1486_v42 = vpop.xlane.xlu0 %1485  ;;  %v3365_v47 = vmul.f32 -1.442695, %v1454_v56 }
 0x38d   : > { %v2741_v31 = vsel %vm2574_vm15, %v2740_v9, %v2736_v45  ;;  %3796 = vrcp.f32 %v2050_v58  ;;  %v3779_v0 = vpop.eup %3778  ;;  %v2750_v8 = vrot.slane %v3777_v16, %v5287_v23  ;;  %v3381_v37 = vmul.f32 -1.442695, %v1486_v42 }
 0x38e   : > { %3798 = vrcp.f32 %v2049_v4  ;;  %v2745_v21 = vrot.slane %v3779_v0, %v5290_v52 }
 0x38f   : > { %v3781_v43 = vpop.eup %3780  ;;  %3800 = vpow2.f32 %v3380_v2  ;;  %v1458_v28 = vpop.xlane.xlu1 %1457 }
 0x390   : > { %v3783_v38 = vpop.eup %3782  ;;  %v2760_v19 = vrot.slane %v3781_v43, %v5305_v33  ;;  %3802 = vpow2.f32 %v3363_v36  ;;  %v2746_v13 = vsel %vm6049_vm3, %v2745_v21, %v2741_v31  ;;  %v1488_v59 = vpop.xlane.xlu0 %1487  ;;  %v3367_v27 = vmul.f32 -1.442695, %v1458_v28 }
 0x391   : > { %v3785_v55 = vpop.eup %3784  ;;  %v2755_v39 = vrot.slane %v3783_v38, %v5314_v50  ;;  %v2751_v53 = vsel %vm6050_vm0, %v2750_v8, %v2746_v13  ;;  %3804 = vpow2.f32 %v3381_v37  ;;  %v3382_v15 = vmul.f32 -1.442695, %v1488_v59 }
 0x392   : > { %v3787_v24 = vpop.eup %3786  ;;  %v2051_v51 = vadd.f32 1.0, %v3785_v55  ;;  %3806 = vpow2.f32 %v3365_v47 }
 0x393   : > { %v3789_v63 = vpop.eup %3788  ;;  %v2756_v18 = vsel %vm2595_vm14, %v2755_v39, %v2751_v53  ;;  %v1462_v7 = vpop.xlane.xlu1 %1461  ;;  %v2032_v40 = vadd.f32 1.0, %v3787_v24 }
 0x394   : > { %v3791_v3 = vpop.eup %3790  ;;  %v2848_v49 = vrot.slane %v3789_v63, %v5207_v10  ;;  %3808 = vrcp.f32 %v2051_v51  ;;  %v2761_v41 = vsel %vm2602_vm7, %v2760_v19, %v2756_v18  ;;  %v1490_v46 = vpop.xlane.xlu0 %1489  ;;  %v3369_v62 = vmul.f32 -1.442695, %v1462_v7 }
 0x395   : > { %v3793_v22 = vpop.eup %3792  ;;  %v2844_v6 = vrot.slane %v3791_v3, %v5089_v32  ;;  %v5567_v14 = vsel %vm3159_vm2, %v2761_v41, %v5486_v20  ;;  %3810 = vpow2.f32 %v3382_v15  ;;  %v3383_v17 = vmul.f32 -1.442695, %v1490_v46  ;;  %vm6051_vm2 = vmmov %vm6050_vm0 }
 0x396   : > { %v3795_v61 = vpop.eup %3794  ;;  %v2052_v54 = vadd.f32 1.0, %v3793_v22  ;;  %3812 = vpow2.f32 %v3367_v27  ;;  %vm6052_vm0 = vmmov %vm6046_vm12 }
 0x397   : > { %v3797_v9 = vpop.eup %3796  ;;  %v2849_v57 = vsel %vm2504_vm4, %v2848_v49, %v2844_v6  ;;  %v1466_v30 = vpop.xlane.xlu1 %1465  ;;  %v2034_v0 = vadd.f32 1.0, %v3795_v61 }
 0x398   : > { %v3799_v11 = vpop.eup %3798  ;;  %v2858_v60 = vrot.slane %v3797_v9, %v5216_v1  ;;  %3814 = vrcp.f32 %v2052_v54  ;;  %v1492_v20 = vpop.xlane.xlu0 %1491  ;;  %v3371_v4 = vmul.f32 -1.442695, %v1466_v30 }
 0x399   : > { %v3801_v58 = vpop.eup %3800  ;;  %v2853_v2 = vrot.slane %v3799_v11, %v5221_v44  ;;  %3816 = vrcp.f32 %v2032_v40  ;;  %v3384_v36 = vmul.f32 -1.442695, %v1492_v20 }
 0x39a   : > { %v3803_v16 = vpop.eup %3802  ;;  %v2053_v45 = vadd.f32 1.0, %v3801_v58  ;;  %3818 = vpow2.f32 %v3383_v17 }
 0x39b   : > { %v2854_v56 = vsel %vm2511_vm6, %v2853_v2, %v2849_v57  ;;  %3820 = vpow2.f32 %v3369_v62  ;;  %v3805_v31 = vpop.eup %3804  ;;  %v1470_v8 = vpop.xlane.xlu1 %1469  ;;  %v2036_v43 = vadd.f32 1.0, %v3803_v16 }
 0x39c   : > { %v2859_v42 = vsel %vm2518_vm8, %v2858_v60, %v2854_v56  ;;  %3822 = vrcp.f32 %v2053_v45  ;;  %v3807_v37 = vpop.eup %3806  ;;  %v2054_v21 = vadd.f32 1.0, %v3805_v31  ;;  %v1494_v47 = vpop.xlane.xlu0 %1493  ;;  %v3373_v51 = vmul.f32 -1.442695, %v1470_v8 }
 0x39d   : > { %3824 = vpow2.f32 %v3384_v36  ;;  %v3385_v19 = vmul.f32 -1.442695, %v1494_v47  ;;  %v2038_v13 = vadd.f32 1.0, %v3807_v37 }
 0x39e   : > { %v3809_v38 = vpop.eup %3808  ;;  %3826 = vpow2.f32 %v3371_v4 }
 0x39f   : > { %v2863_v28 = vrot.slane %v3809_v38, %v5234_v34  ;;  %3828 = vrcp.f32 %v2054_v21  ;;  %v3811_v55 = vpop.eup %3810  ;;  %v1504_v39 = vpop.xlane.xlu1 %1503 }
 0x3a0   : > { %3830 = vrcp.f32 %v2034_v0  ;;  %v3813_v59 = vpop.eup %3812  ;;  %v2055_v53 = vadd.f32 1.0, %v3811_v55  ;;  %v1496_v15 = vpop.xlane.xlu0 %1495  ;;  %v3390_v7 = vmul.f32 -1.442695, %v1504_v39 }
 0x3a1   : > { %v2864_v24 = vsel %vm2525_vm9, %v2863_v28, %v2859_v42  ;;  %3832 = vrcp.f32 %v2036_v43  ;;  %v3386_v18 = vmul.f32 -1.442695, %v1496_v15  ;;  %v2040_v40 = vadd.f32 1.0, %v3813_v59 }
 0x3a2   : > { %v3815_v63 = vpop.eup %3814  ;;  %3834 = vpow2.f32 %v3385_v19 }
 0x3a3   : > { %v5576_v27 = vpop.eup %3816  ;;  %v2868_v3 = vrot.slane %v3815_v63, %v5230_v29  ;;  %3836 = vrcp.f32 %v2055_v53  ;;  %v1508_v41 = vpop.xlane.xlu1 %1507 }
 0x3a4   : > { %v3819_v49 = vpop.eup %3818  ;;  %3838 = vrcp.f32 %v2038_v13  ;;  %v1498_v61 = vpop.xlane.xlu0 %1497  ;;  %v3392_v4 = vmul.f32 -1.442695, %v1508_v41 }
 0x3a5   : > { %v3821_v22 = vpop.eup %3820  ;;  %v2869_v6 = vsel %vm2532_vm10, %v2868_v3, %v2864_v24  ;;  %v2056_v46 = vadd.f32 1.0, %v3819_v49  ;;  %3840 = vpow2.f32 %v3373_v51  ;;  %v3387_v57 = vmul.f32 -1.442695, %v1498_v61 }
 0x3a6   : > { %v3823_v54 = vpop.eup %3822  ;;  %3842 = vpow2.f32 %v3386_v18  ;;  %v2042_v11 = vadd.f32 1.0, %v3821_v22 }
 0x3a7   : > { %v3825_v17 = vpop.eup %3824  ;;  %v2873_v9 = vrot.slane %v3823_v54, %v5248_v26  ;;  %3844 = vrcp.f32 %v2056_v46  ;;  %v1538_v30 = vpop.xlane.xlu1 %1537 }
 0x3a8   : > { %v3827_v62 = vpop.eup %3826  ;;  %v2057_v60 = vadd.f32 1.0, %v3825_v17  ;;  %3846 = vpow2.f32 %v3390_v7  ;;  %v1500_v20 = vpop.xlane.xlu0 %1499  ;;  %v3407_v19 = vmul.f32 -1.442695, %v1538_v30 }
 0x3a9   : > { %v3829_v58 = vpop.eup %3828  ;;  %v2874_v2 = vsel %vm6046_vm12, %v2873_v9, %v2869_v6  ;;  %3848 = vrcp.f32 %v2040_v40  ;;  %v3388_v36 = vmul.f32 -1.442695, %v1500_v20  ;;  %v2044_v0 = vadd.f32 1.0, %v3827_v62  ;;  %vm6053_vm12 = vmmov %vm6047_vm1 }
 0x3aa   : > { %v5582_v16 = vpop.eup %3830  ;;  %v2878_v45 = vrot.slane %v3829_v58, %v5240_v5  ;;  %3850 = vrcp.f32 %v2057_v60 }
 0x3ab   : > { %v5585_v56 = vpop.eup %3832  ;;  %3852 = vpow2.f32 %v3387_v57  ;;  %v1540_v8 = vpop.xlane.xlu1 %1539 }
 0x3ac   : > { %v3835_v31 = vpop.eup %3834  ;;  %v2879_v42 = vsel %vm6047_vm1, %v2878_v45, %v2874_v2  ;;  %3854 = vrcp.f32 %v2042_v11  ;;  %v1502_v21 = vpop.xlane.xlu0 %1501  ;;  %v3408_v59 = vmul.f32 -1.442695, %v1540_v8  ;;  %vm6054_vm1 = vmmov %vm6048_vm11 }
 0x3ad   : > { %v3837_v37 = vpop.eup %3836  ;;  %v2058_v43 = vadd.f32 1.0, %v3835_v31  ;;  %3856 = vpow2.f32 %v3388_v36  ;;  %v3389_v28 = vmul.f32 -1.442695, %v1502_v21 }
 0x3ae   : > { %v5588_v47 = vpop.eup %3838  ;;  %v2883_v38 = vrot.slane %v3837_v37, %v5263_v25  ;;  %3858 = vpow2.f32 %v3392_v4 }
 0x3af   : > { %v3841_v55 = vpop.eup %3840  ;;  %3860 = vrcp.f32 %v2058_v43  ;;  %v1512_v24 = vpop.xlane.xlu1 %1511 }
 0x3b0   : > { %v3843_v13 = vpop.eup %3842  ;;  %v2884_v39 = vsel %vm2553_vm13, %v2883_v38, %v2879_v42  ;;  %3862 = vrcp.f32 %v2044_v0  ;;  %v1440_v15 = vpop.xlane.xlu0 %1439  ;;  %v2046_v3 = vadd.f32 1.0, %v3841_v55  ;;  %v3394_v41 = vmul.f32 -1.442695, %v1512_v24 }
 0x3b1   : > { %v3845_v53 = vpop.eup %3844  ;;  %v2059_v51 = vadd.f32 1.0, %v3843_v13  ;;  %3864 = vpow2.f32 %v3389_v28  ;;  %v3358_v49 = vmul.f32 -1.442695, %v1440_v15 }
 0x3b2   : > { %v3847_v63 = vpop.eup %3846  ;;  %v2888_v18 = vrot.slane %v3845_v53, %v5255_v35  ;;  %3866 = vpow2.f32 %v3407_v19 }
 0x3b3   : > { %v5593_v7 = vpop.eup %3848  ;;  %3868 = vrcp.f32 %v2059_v51  ;;  %v1514_v40 = vpop.xlane.xlu1 %1513  ;;  %v2063_v54 = vadd.f32 1.0, %v3847_v63 }
 0x3b4   : > { %v3851_v22 = vpop.eup %3850  ;;  %v2889_v6 = vsel %vm6048_vm11, %v2888_v18, %v2884_v39  ;;  %3870 = vpow2.f32 %v3408_v59  ;;  %v1444_v17 = vpop.xlane.xlu0 %1443  ;;  %v3395_v2 = vmul.f32 -1.442695, %v1514_v40  ;;  %vm6055_vm11 = vmmov %vm6049_vm3 }
 0x3b5   : > { %v3853_v46 = vpop.eup %3852  ;;  %v2893_v61 = vrot.slane %v3851_v22, %v5274_v12  ;;  %3872 = vpow2.f32 %v3358_v49  ;;  %v3360_v60 = vmul.f32 -1.442695, %v1444_v17 }
 0x3b6   : > { %v5597_v9 = vpop.eup %3854  ;;  %3874 = vrcp.f32 %v2046_v3  ;;  %v2060_v57 = vadd.f32 1.0, %v3853_v46 }
 0x3b7   : > { %v3857_v62 = vpop.eup %3856  ;;  %v2894_v11 = vsel %vm2567_vm5, %v2893_v61, %v2889_v6  ;;  %3876 = vpow2.f32 %v3394_v41  ;;  %v1516_v20 = vpop.xlane.xlu1 %1515 }
 0x3b8   : > { %v3859_v30 = vpop.eup %3858  ;;  %3878 = vrcp.f32 %v2060_v57  ;;  %v2061_v58 = vadd.f32 1.0, %v3857_v62  ;;  %v3396_v4 = vmul.f32 -1.442695, %v1516_v20  ;;  %v1448_v36 = vpop.xlane.xlu0 %1447 }
 0x3b9   : > { %v3861_v45 = vpop.eup %3860  ;;  %3880 = vrcp.f32 %v2063_v54  ;;  %v3362_v8 = vmul.f32 -1.442695, %v1448_v36  ;;  %v2065_v21 = vadd.f32 1.0, %v3859_v30 }
 0x3ba   : > { %v5600_v31 = vpop.eup %3862  ;;  %v2898_v42 = vrot.slane %v3861_v45, %v5269_v48  ;;  %3882 = vrcp.f32 %v2061_v58 }
 0x3bb   : > { %v3865_v0 = vpop.eup %3864  ;;  %3884 = vpow2.f32 %v3360_v60  ;;  %v1518_v19 = vpop.xlane.xlu1 %1517 }
 0x3bc   : > { %v3867_v37 = vpop.eup %3866  ;;  %v2899_v43 = vsel %vm2574_vm15, %v2898_v42, %v2894_v11  ;;  %v2062_v38 = vadd.f32 1.0, %v3865_v0  ;;  %3886 = vpow2.f32 %v3395_v2  ;;  %v3397_v55 = vmul.f32 -1.442695, %v1518_v19  ;;  %v1452_v13 = vpop.xlane.xlu0 %1451 }
 0x3bd   : > { %v3869_v28 = vpop.eup %3868  ;;  %3888 = vpow2.f32 %v3396_v4  ;;  %v3364_v53 = vmul.f32 -1.442695, %v1452_v13  ;;  %v2080_v63 = vadd.f32 1.0, %v3867_v37 }
 0x3be   : > { %v3871_v39 = vpop.eup %3870  ;;  %v2903_v59 = vrot.slane %v3869_v28, %v5290_v52  ;;  %3890 = vrcp.f32 %v2062_v38 }
 0x3bf   : > { %v3873_v24 = vpop.eup %3872  ;;  %3892 = vpow2.f32 %v3362_v8  ;;  %v1520_v3 = vpop.xlane.xlu1 %1519  ;;  %v2081_v41 = vadd.f32 1.0, %v3871_v39 }
 0x3c0   : > { %v5605_v51 = vpop.eup %3874  ;;  %v2904_v15 = vsel %vm6049_vm3, %v2903_v59, %v2899_v43  ;;  %3894 = vrcp.f32 %v2065_v21  ;;  %v2031_v18 = vadd.f32 1.0, %v3873_v24  ;;  %v1456_v22 = vpop.xlane.xlu0 %1455  ;;  %v3398_v54 = vmul.f32 -1.442695, %v1520_v3 }
 0x3c1   : > { %v3877_v49 = vpop.eup %3876  ;;  %3896 = vpow2.f32 %v3397_v55  ;;  %v3366_v40 = vmul.f32 -1.442695, %v1456_v22  ;;  %vm3161_vm3 = vcmask 1043459  }
 0x3c2   : > { %v3879_v6 = vpop.eup %3878  ;;  %3898 = vrcp.f32 %v2031_v18  ;;  %v2067_v30 = vadd.f32 1.0, %v3877_v49 }
 0x3c3   : > { %v5608_v46 = vpop.eup %3880  ;;  %v2908_v61 = vrot.slane %v3879_v6, %v5287_v23  ;;  %3900 = vpow2.f32 %v3364_v53  ;;  %v1522_v57 = vpop.xlane.xlu1 %1521 }
 0x3c4   : > { %v3883_v17 = vpop.eup %3882  ;;  %3902 = vrcp.f32 %v2080_v63  ;;  %v1460_v58 = vpop.xlane.xlu0 %1459  ;;  %v3399_v36 = vmul.f32 -1.442695, %v1522_v57  ;;  %v2769_v63 = vrot.slane %v5576_v27, %v5207_v10 }
 0x3c5   : > { %v3885_v62 = vpop.eup %3884  ;;  %v2909_v11 = vsel %vm6051_vm2, %v2908_v61, %v2904_v15  ;;  %v2913_v60 = vrot.slane %v3883_v17, %v5314_v50  ;;  %3904 = vrcp.f32 %v2081_v41  ;;  %v3368_v45 = vmul.f32 -1.442695, %v1460_v58 }
 0x3c6   : > { %v3887_v2 = vpop.eup %3886  ;;  %v2033_v20 = vadd.f32 1.0, %v3885_v62  ;;  %3906 = vpow2.f32 %v3366_v40 }
 0x3c7   : > { %v3889_v4 = vpop.eup %3888  ;;  %3908 = vpow2.f32 %v3398_v54  ;;  %v2914_v42 = vsel %vm2595_vm14, %v2913_v60, %v2909_v11  ;;  %v1524_v8 = vpop.xlane.xlu1 %1523  ;;  %v2068_v21 = vadd.f32 1.0, %v3887_v2 }
 0x3c8   : > { %v3891_v0 = vpop.eup %3890  ;;  %3910 = vrcp.f32 %v2033_v20  ;;  %v1464_v38 = vpop.xlane.xlu0 %1463  ;;  %v2069_v39 = vadd.f32 1.0, %v3889_v4  ;;  %v3400_v22 = vmul.f32 -1.442695, %v1524_v8  ;;  %v2779_v4 = vrot.slane %v5582_v16, %v5216_v1 }
 0x3c9   : > { %v3893_v37 = vpop.eup %3892  ;;  %v2918_v43 = vrot.slane %v3891_v0, %v5305_v33  ;;  %3912 = vrcp.f32 %v2067_v30  ;;  %v3370_v55 = vmul.f32 -1.442695, %v1464_v38 }
 0x3ca   : > { %v5615_v19 = vpop.eup %3894  ;;  %v2035_v28 = vadd.f32 1.0, %v3893_v37  ;;  %3914 = vpow2.f32 %v3368_v45 }
 0x3cb   : > { %v3897_v13 = vpop.eup %3896  ;;  %3916 = vpow2.f32 %v3399_v36  ;;  %v5618_v59 = vsel %vm2602_vm7, %v2918_v43, %v2914_v42  ;;  %v1526_v53 = vpop.xlane.xlu1 %1525 }
 0x3cc   : > { %v3899_v24 = vpop.eup %3898  ;;  %3918 = vrcp.f32 %v2035_v28  ;;  %v1468_v3 = vpop.xlane.xlu0 %1467  ;;  %v2070_v17 = vadd.f32 1.0, %v3897_v13  ;;  %v3401_v11 = vmul.f32 -1.442695, %v1526_v53 }
 0x3cd   : > { %v3901_v15 = vpop.eup %3900  ;;  %v2765_v18 = vrot.slane %v3899_v24, %v5089_v32  ;;  %3920 = vrcp.f32 %v2068_v21  ;;  %v3372_v6 = vmul.f32 -1.442695, %v1468_v3  ;;  %v2789_v24 = vrot.slane %v5585_v56, %v5230_v29 }
 0x3ce   : > { %v5623_v49 = vpop.eup %3902  ;;  %v2037_v41 = vadd.f32 1.0, %v3901_v15  ;;  %3922 = vpow2.f32 %v3370_v55 }
 0x3cf   : > { %v5625_v40 = vpop.eup %3904  ;;  %v2770_v61 = vsel %vm2504_vm4, %v2769_v63, %v2765_v18  ;;  %3924 = vrcp.f32 %v2069_v39  ;;  %v1528_v57 = vpop.xlane.xlu1 %1527 }
 0x3d0   : > { %v3907_v54 = vpop.eup %3906  ;;  %3926 = vrcp.f32 %v2037_v41  ;;  %v1506_v60 = vpop.xlane.xlu0 %1505  ;;  %v3402_v43 = vmul.f32 -1.442695, %v1528_v57 }
 0x3d1   : > { %v3909_v27 = vpop.eup %3908  ;;  %v2039_v62 = vadd.f32 1.0, %v3907_v54  ;;  %3928 = vpow2.f32 %v3372_v6  ;;  %v3391_v58 = vmul.f32 -1.442695, %v1506_v60 }
 0x3d2   : > { %v3911_v30 = vpop.eup %3910  ;;  %3930 = vpow2.f32 %v3400_v22  ;;  %v2071_v36 = vadd.f32 1.0, %v3909_v27  ;;  %v2799_v27 = vrot.slane %v5588_v47, %v5240_v5  ;;  %v2809_v47 = vrot.slane %v5593_v7, %v5255_v35 }
 0x3d3   : > { %v5628_v2 = vpop.eup %3912  ;;  %v2774_v20 = vrot.slane %v3911_v30, %v5221_v44  ;;  %3932 = vrcp.f32 %v2039_v62  ;;  %v1530_v42 = vpop.xlane.xlu1 %1529 }
 0x3d4   : > { %v3915_v45 = vpop.eup %3914  ;;  %3934 = vrcp.f32 %v2070_v17  ;;  %v1536_v21 = vpop.xlane.xlu0 %1535  ;;  %v3403_v41 = vmul.f32 -1.442695, %v1530_v42 }
 0x3d5   : > { %v3917_v0 = vpop.eup %3916  ;;  %v2775_v8 = vsel %vm2511_vm6, %v2774_v20, %v2770_v61  ;;  %v2041_v37 = vadd.f32 1.0, %v3915_v45  ;;  %3936 = vpow2.f32 %v3401_v11  ;;  %v3406_v55 = vmul.f32 -1.442695, %v1536_v21 }
 0x3d6   : > { %v3919_v38 = vpop.eup %3918  ;;  %v2780_v28 = vsel %vm2518_vm8, %v2779_v4, %v2775_v8  ;;  %3938 = vpow2.f32 %v3391_v58  ;;  %v2072_v53 = vadd.f32 1.0, %v3917_v0 }
 0x3d7   : > { %v5635_v13 = vpop.eup %3920  ;;  %v2784_v39 = vrot.slane %v3919_v38, %v5234_v34  ;;  %3940 = vrcp.f32 %v2041_v37  ;;  %v1532_v15 = vpop.xlane.xlu1 %1531 }
 0x3d8   : > { %v3923_v16 = vpop.eup %3922  ;;  %3942 = vrcp.f32 %v2071_v36  ;;  %v1510_v22 = vpop.xlane.xlu0 %1509  ;;  %v3404_v11 = vmul.f32 -1.442695, %v1532_v15 }
 0x3d9   : > { %v5640_v63 = vpop.eup %3924  ;;  %v2785_v18 = vsel %vm2525_vm9, %v2784_v39, %v2780_v28  ;;  %v2043_v3 = vadd.f32 1.0, %v3923_v16  ;;  %3944 = vpow2.f32 %v3402_v43  ;;  %v3393_v56 = vmul.f32 -1.442695, %v1510_v22 }
 0x3da   : > { %v3927_v6 = vpop.eup %3926  ;;  %v2790_v61 = vsel %vm2532_vm10, %v2789_v24, %v2785_v18  ;;  %3946 = vpow2.f32 %v3406_v55 }
 0x3db   : > { %v3929_v54 = vpop.eup %3928  ;;  %v2794_v17 = vrot.slane %v3927_v6, %v5248_v26  ;;  %3948 = vrcp.f32 %v2043_v3  ;;  %v1564_v60 = vpop.xlane.xlu1 %1563  ;;  %v2819_v3 = vrot.slane %v5597_v9, %v5269_v48 }
 0x3dc   : > { %v3931_v57 = vpop.eup %3930  ;;  %3950 = vrcp.f32 %v2072_v53  ;;  %v2045_v62 = vadd.f32 1.0, %v3929_v54  ;;  %v3420_v20 = vmul.f32 -1.442695, %v1564_v60  ;;  %v1542_v45 = vpop.xlane.xlu0 %1541 }
 0x3dd   : > { %v3933_v30 = vpop.eup %3932  ;;  %v2795_v58 = vsel %vm6052_vm0, %v2794_v17, %v2790_v61  ;;  %3952 = vpow2.f32 %v3403_v41  ;;  %v3409_v0 = vmul.f32 -1.442695, %v1542_v45  ;;  %v2073_v21 = vadd.f32 1.0, %v3931_v57 }
 0x3de   : > { %v5648_v4 = vpop.eup %3934  ;;  %v2800_v36 = vsel %vm6053_vm12, %v2799_v27, %v2795_v58  ;;  %v2804_v42 = vrot.slane %v3933_v30, %v5263_v25  ;;  %3954 = vrcp.f32 %v2045_v62  ;;  %v2829_v30 = vrot.slane %v5600_v31, %v5287_v23 }
 0x3df   : > { %v3937_v8 = vpop.eup %3936  ;;  %3956 = vpow2.f32 %v3393_v56  ;;  %v1566_v38 = vpop.xlane.xlu1 %1565  ;;  %v2839_v31 = vrot.slane %v5605_v51, %v5305_v33  ;;  %vm3163_vm0 = vcmask 1044484   ;;  %vm6056_vm12 = vcmask 458112  }
 0x3e0   : > { %v3939_v37 = vpop.eup %3938  ;;  %v2805_v43 = vsel %vm2553_vm13, %v2804_v42, %v2800_v36  ;;  %3958 = vpow2.f32 %v3404_v11  ;;  %v3421_v16 = vmul.f32 -1.442695, %v1566_v38  ;;  %v1544_v24 = vpop.xlane.xlu0 %1543  ;;  %v2074_v6 = vadd.f32 1.0, %v3937_v8 }
 0x3e1   : > { %v3941_v28 = vpop.eup %3940  ;;  %v2810_v55 = vsel %vm6054_vm1, %v2809_v47, %v2805_v43  ;;  %v2064_v39 = vadd.f32 1.0, %v3939_v37  ;;  %3960 = vpow2.f32 %v3420_v20  ;;  %v3410_v7 = vmul.f32 -1.442695, %v1544_v24 }
 0x3e2   : > { %v5656_v53 = vpop.eup %3942  ;;  %v2814_v15 = vrot.slane %v3941_v28, %v5274_v12  ;;  %3962 = vpow2.f32 %v3409_v0  ;;  %v2923_v24 = vrot.slane %v5608_v46, %v5089_v32  ;;  %vm6057_vm1 = vcmask 523712  }
 0x3e3   : > { %v3945_v18 = vpop.eup %3944  ;;  %3964 = vrcp.f32 %v2064_v39  ;;  %v1570_v61 = vpop.xlane.xlu1 %1569 }
 0x3e4   : > { %v3947_v41 = vpop.eup %3946  ;;  %v2815_v22 = vsel %vm2567_vm5, %v2814_v15, %v2810_v55  ;;  %3966 = vrcp.f32 %v2073_v21  ;;  %v3423_v57 = vmul.f32 -1.442695, %v1570_v61  ;;  %v1546_v27 = vpop.xlane.xlu0 %1545  ;;  %v2075_v45 = vadd.f32 1.0, %v3945_v18 }
 0x3e5   : > { %v3949_v54 = vpop.eup %3948  ;;  %v2820_v17 = vsel %vm2574_vm15, %v2819_v3, %v2815_v22  ;;  %v2079_v56 = vadd.f32 1.0, %v3947_v41  ;;  %3968 = vpow2.f32 %v3421_v16  ;;  %v3411_v9 = vmul.f32 -1.442695, %v1546_v27 }
 0x3e6   : > { %v5663_v62 = vpop.eup %3950  ;;  %v2824_v11 = vrot.slane %v3949_v54, %v5290_v52  ;;  %3970 = vpow2.f32 %v3410_v7 }
 0x3e7   : > { %v3953_v60 = vpop.eup %3952  ;;  %3972 = vrcp.f32 %v2079_v56  ;;  %v1572_v36 = vpop.xlane.xlu1 %1571  ;;  %v2932_v56 = vrot.slane %v5615_v19, %v5221_v44 }
 0x3e8   : > { %v3955_v58 = vpop.eup %3954  ;;  %v2825_v20 = vsel %vm6055_vm11, %v2824_v11, %v2820_v17  ;;  %3974 = vrcp.f32 %v2074_v6  ;;  %v3424_v47 = vmul.f32 -1.442695, %v1572_v36  ;;  %v1548_v37 = vpop.xlane.xlu0 %1547  ;;  %v2076_v21 = vadd.f32 1.0, %v3953_v60 }
 0x3e9   : > { %v3957_v42 = vpop.eup %3956  ;;  %v2830_v0 = vsel %vm6051_vm2, %v2829_v30, %v2825_v20  ;;  %v2834_v8 = vrot.slane %v3955_v58, %v5314_v50  ;;  %3976 = vpow2.f32 %v3423_v57  ;;  %v3412_v39 = vmul.f32 -1.442695, %v1548_v37  ;;  %vm6060_vm2 = vmmov %vm6056_vm12 }
 0x3ea   : > { %v3959_v43 = vpop.eup %3958  ;;  %v2066_v38 = vadd.f32 1.0, %v3957_v42  ;;  %3978 = vpow2.f32 %v3411_v9  ;;  %vm6058_vm11 = vcmask 654912  }
 0x3eb   : > { %v3961_v28 = vpop.eup %3960  ;;  %v2835_v55 = vsel %vm2595_vm14, %v2834_v8, %v2830_v0  ;;  %3980 = vpow2.f32 %v3424_v47  ;;  %v1574_v15 = vpop.xlane.xlu1 %1573  ;;  %v2077_v51 = vadd.f32 1.0, %v3959_v43  ;;  %v3011_v0 = vrot.slane %v5625_v40, %v5221_v44 }
 0x3ec   : > { %v3963_v16 = vpop.eup %3962  ;;  %3982 = vrcp.f32 %v2066_v38  ;;  %v2840_v7 = vsel %vm2602_vm7, %v2839_v31, %v2835_v55  ;;  %v3425_v3 = vmul.f32 -1.442695, %v1574_v15  ;;  %v1550_v41 = vpop.xlane.xlu0 %1549  ;;  %v2093_v54 = vadd.f32 1.0, %v3961_v28 }
 0x3ed   : > { %v3965_v18 = vpop.eup %3964  ;;  %3984 = vrcp.f32 %v2075_v45  ;;  %v3162_v22 = vsel %vm3161_vm3, %v2840_v7, %v5567_v14  ;;  %v3413_v57 = vmul.f32 -1.442695, %v1550_v41  ;;  %v2082_v14 = vadd.f32 1.0, %v3963_v16 }
 0x3ee   : > { %v5679_v6 = vpop.eup %3966  ;;  %v2927_v61 = vrot.slane %v3965_v18, %v5207_v10  ;;  %3986 = vrcp.f32 %v2076_v21  ;;  %v5684_v46 = vsel %vm3163_vm0, %v5618_v59, %v3162_v22  ;;  %v3006_v45 = vrot.slane %v5623_v49, %v5207_v10  ;;  %vm6061_vm0 = vmmov %vm6057_vm1 }
 0x3ef   : > { %v3969_v17 = vpop.eup %3968  ;;  %3988 = vpow2.f32 %v3412_v39  ;;  %v1576_v9 = vpop.xlane.xlu1 %1575  ;;  %v2942_v7 = vrot.slane %v5628_v2, %v5234_v34  ;;  %v2947_v41 = vrot.slane %v5635_v13, %v5230_v29  ;;  %vm6059_vm3 = vcmask 851712  }
 0x3f0   : > { %v3971_v27 = vpop.eup %3970  ;;  %v2928_v11 = vsel %vm2504_vm4, %v2927_v61, %v2923_v24  ;;  %3990 = vpow2.f32 %v3425_v3  ;;  %v3426_v58 = vmul.f32 -1.442695, %v1576_v9  ;;  %v1552_v20 = vpop.xlane.xlu0 %1551  ;;  %v2094_v36 = vadd.f32 1.0, %v3969_v17 }
 0x3f1   : > { %v3973_v60 = vpop.eup %3972  ;;  %3992 = vrcp.f32 %v2077_v51  ;;  %v2933_v30 = vsel %vm2511_vm6, %v2932_v56, %v2928_v11  ;;  %v3414_v8 = vmul.f32 -1.442695, %v1552_v20  ;;  %v2083_v43 = vadd.f32 1.0, %v3971_v27 }
 0x3f2   : > { %v5690_v59 = vpop.eup %3974  ;;  %v3002_v19 = vrot.slane %v3973_v60, %v5089_v32  ;;  %3994 = vrcp.f32 %v2093_v54  ;;  %v2952_v56 = vrot.slane %v5640_v63, %v5248_v26  ;;  %v2957_v11 = vrot.slane %v5648_v4, %v5240_v5 }
 0x3f3   : > { %v3977_v42 = vpop.eup %3976  ;;  %3996 = vpow2.f32 %v3413_v57  ;;  %v1578_v31 = vpop.xlane.xlu1 %1577  ;;  %v2962_v60 = vrot.slane %v5656_v53, %v5263_v25 }
 0x3f4   : > { %v3979_v47 = vpop.eup %3978  ;;  %v3007_v37 = vsel %vm2504_vm4, %v3006_v45, %v3002_v19  ;;  %3998 = vrcp.f32 %v2082_v14  ;;  %v3427_v49 = vmul.f32 -1.442695, %v1578_v31  ;;  %v1554_v28 = vpop.xlane.xlu0 %1553  ;;  %v2096_v24 = vadd.f32 1.0, %v3977_v42 }
 0x3f5   : > { %v3981_v21 = vpop.eup %3980  ;;  %v5699_v38 = vsel %vm2511_vm6, %v3011_v0, %v3007_v37  ;;  %4000 = vpow2.f32 %v3426_v58  ;;  %v3415_v39 = vmul.f32 -1.442695, %v1554_v28  ;;  %v2084_v18 = vadd.f32 1.0, %v3979_v47 }
 0x3f6   : > { %v3983_v55 = vpop.eup %3982  ;;  %4002 = vrcp.f32 %v2094_v36  ;;  %v2097_v61 = vadd.f32 1.0, %v3981_v21  ;;  %v2967_v45 = vrot.slane %v5663_v62, %v5255_v35  ;;  %v2972_v0 = vrot.slane %v5679_v6, %v5274_v12 }
 0x3f7   : > { %v5701_v16 = vpop.eup %3984  ;;  %v2937_v40 = vrot.slane %v3983_v55, %v5216_v1  ;;  %4004 = vpow2.f32 %v3414_v8  ;;  %v1580_v51 = vpop.xlane.xlu1 %1579  ;;  %v2977_v37 = vrot.slane %v5690_v59, %v5269_v48 }
 0x3f8   : > { %v5704_v15 = vpop.eup %3986  ;;  %4006 = vrcp.f32 %v2083_v43  ;;  %v1556_v54 = vpop.xlane.xlu0 %1555  ;;  %v3428_v2 = vmul.f32 -1.442695, %v1580_v51 }
 0x3f9   : > { %v3989_v3 = vpop.eup %3988  ;;  %v2938_v22 = vsel %vm2518_vm8, %v2937_v40, %v2933_v30  ;;  %4008 = vpow2.f32 %v3427_v49  ;;  %v3416_v14 = vmul.f32 -1.442695, %v1556_v54 }
 0x3fa   : > { %v3991_v17 = vpop.eup %3990  ;;  %v2943_v57 = vsel %vm2525_vm9, %v2942_v7, %v2938_v22  ;;  %4010 = vpow2.f32 %v3415_v39  ;;  %v2085_v30 = vadd.f32 1.0, %v3989_v3 }
 0x3fb   : > { %v5714_v27 = vpop.eup %3992  ;;  %v2948_v13 = vsel %vm2532_vm10, %v2947_v41, %v2943_v57  ;;  %4012 = vrcp.f32 %v2096_v24  ;;  %v1582_v58 = vpop.xlane.xlu1 %1581  ;;  %v2098_v19 = vadd.f32 1.0, %v3991_v17 }
 0x3fc   : > { %v5719_v9 = vpop.eup %3994  ;;  %v2953_v63 = vsel %vm6056_vm12, %v2952_v56, %v2948_v13  ;;  %4014 = vrcp.f32 %v2084_v18  ;;  %v1558_v36 = vpop.xlane.xlu0 %1557  ;;  %v3429_v62 = vmul.f32 -1.442695, %v1582_v58  ;;  %vm3165_vm12 = vcmask 1045509  }
 0x3fd   : > { %v3997_v20 = vpop.eup %3996  ;;  %v2958_v4 = vsel %vm6057_vm1, %v2957_v11, %v2953_v63  ;;  %4016 = vrcp.f32 %v2097_v61  ;;  %v3417_v53 = vmul.f32 -1.442695, %v1558_v36  ;;  %vm6062_vm1 = vmmov %vm6058_vm11 }
 0x3fe   : > { %v5727_v42 = vpop.eup %3998  ;;  %4018 = vpow2.f32 %v3428_v2  ;;  %v2963_v8 = vsel %vm2553_vm13, %v2962_v60, %v2958_v4  ;;  %v2086_v21 = vadd.f32 1.0, %v3997_v20 }
 0x3ff   : > { %v4001_v47 = vpop.eup %4000  ;;  %4020 = vpow2.f32 %v3416_v14  ;;  %v2968_v43 = vsel %vm6058_vm11, %v2967_v45, %v2963_v8  ;;  %v1584_v49 = vpop.xlane.xlu1 %1583  ;;  %vm6065_vm11 = vmmov %vm6060_vm2 }
 0x400   : > { %v5735_v31 = vpop.eup %4002  ;;  %4022 = vrcp.f32 %v2085_v30  ;;  %v2973_v28 = vsel %vm2567_vm5, %v2972_v0, %v2968_v43  ;;  %v2099_v59 = vadd.f32 1.0, %v4001_v47  ;;  %v3430_v18 = vmul.f32 -1.442695, %v1584_v49 }
 0x401   : > { %v4005_v6 = vpop.eup %4004  ;;  %4024 = vrcp.f32 %v2098_v19  ;;  %v1560_v55 = vpop.xlane.xlu0 %1559  ;;  %v5739_v39 = vsel %vm2574_vm15, %v2977_v37, %v2973_v28 }
 0x402   : > { %v5741_v40 = vpop.eup %4006  ;;  %4026 = vpow2.f32 %v3417_v53  ;;  %v3418_v24 = vmul.f32 -1.442695, %v1560_v55  ;;  %v2087_v3 = vadd.f32 1.0, %v4005_v6 }
 0x403   : > { %v4009_v7 = vpop.eup %4008  ;;  %4028 = vpow2.f32 %v3429_v62  ;;  %v1586_v41 = vpop.xlane.xlu1 %1585 }
 0x404   : > { %v4011_v51 = vpop.eup %4010  ;;  %4030 = vrcp.f32 %v2086_v21  ;;  %v2100_v61 = vadd.f32 1.0, %v4009_v7  ;;  %v3431_v13 = vmul.f32 -1.442695, %v1586_v41 }
 0x405   : > { %v5743_v22 = vpop.eup %4012  ;;  %4032 = vpow2.f32 %v3418_v24  ;;  %v1568_v54 = vpop.xlane.xlu0 %1567  ;;  %v2088_v2 = vadd.f32 1.0, %v4011_v51 }
 0x406   : > { %v5745_v17 = vpop.eup %4014  ;;  %4034 = vrcp.f32 %v2099_v59  ;;  %v3422_v56 = vmul.f32 -1.442695, %v1568_v54 }
 0x407   : > { %v5747_v57 = vpop.eup %4016  ;;  %4036 = vpow2.f32 %v3430_v18  ;;  %v1588_v14 = vpop.xlane.xlu1 %1587 }
 0x408   : > { %v4019_v11 = vpop.eup %4018  ;;  %4038 = vrcp.f32 %v2087_v3  ;;  %v3432_v63 = vmul.f32 -1.442695, %v1588_v14 }
 0x409   : > { %v4021_v60 = vpop.eup %4020  ;;  %4040 = vrcp.f32 %v2100_v61  ;;  %v1562_v30 = vpop.xlane.xlu0 %1561  ;;  %v2101_v4 = vadd.f32 1.0, %v4019_v11 }
 0x40a   : > { %v5749_v58 = vpop.eup %4022  ;;  %4042 = vpow2.f32 %v3422_v56  ;;  %v3419_v20 = vmul.f32 -1.442695, %v1562_v30  ;;  %v2089_v36 = vadd.f32 1.0, %v4021_v60  ;;  %v3016_v30 = vrot.slane %v5727_v42, %v5216_v1 }
 0x40b   : > { %v5751_v45 = vpop.eup %4024  ;;  %4044 = vrcp.f32 %v2088_v2  ;;  %v1590_v0 = vpop.xlane.xlu1 %1589  ;;  %v3026_v42 = vrot.slane %v5745_v17, %v5230_v29 }
 0x40c   : > { %v4027_v19 = vpop.eup %4026  ;;  %4046 = vpow2.f32 %v3431_v13  ;;  %v3433_v8 = vmul.f32 -1.442695, %v1590_v0 }
 0x40d   : > { %v4029_v53 = vpop.eup %4028  ;;  %4048 = vpow2.f32 %v3432_v63  ;;  %v1534_v47 = vpop.xlane.xlu0 %1533  ;;  %v2090_v62 = vadd.f32 1.0, %v4027_v19  ;;  %v3021_v19 = vrot.slane %v5741_v40, %v5234_v34  ;;  %v2982_v40 = vrot.slane %v5701_v16, %v5290_v52 }
 0x40e   : > { %v5753_v37 = vpop.eup %4030  ;;  %4050 = vpow2.f32 %v3419_v20  ;;  %v3405_v21 = vmul.f32 -1.442695, %v1534_v47  ;;  %v2102_v13 = vadd.f32 1.0, %v4029_v53 }
 0x40f   : > { %v4033_v43 = vpop.eup %4032  ;;  %4052 = vrcp.f32 %v2101_v4  ;;  %v1592_v28 = vpop.xlane.xlu1 %1591 }
 0x410   : > { %v5755_v49 = vpop.eup %4034  ;;  %4054 = vrcp.f32 %v2089_v36  ;;  %v3434_v55 = vmul.f32 -1.442695, %v1592_v28  ;;  %v2091_v7 = vadd.f32 1.0, %v4033_v43  ;;  %v3017_v43 = vsel %vm2518_vm8, %v3016_v30, %v5699_v38 }
 0x411   : > { %v4037_v6 = vpop.eup %4036  ;;  %4056 = vpow2.f32 %v3433_v8  ;;  %v1594_v59 = vpop.xlane.xlu0 %1593  ;;  %v3036_v38 = vrot.slane %v5753_v37, %v5240_v5 }
 0x412   : > { %v5757_v24 = vpop.eup %4038  ;;  %4058 = vrcp.f32 %v2090_v62  ;;  %v3435_v18 = vmul.f32 -1.442695, %v1594_v59  ;;  %v2103_v20 = vadd.f32 1.0, %v4037_v6  ;;  %v3022_v6 = vsel %vm2525_vm9, %v3021_v19, %v3017_v43 }
 0x413   : > { %v5759_v51 = vpop.eup %4040  ;;  %4060 = vpow2.f32 %v3405_v21  ;;  %v1598_v41 = vpop.xlane.xlu1 %1597  ;;  %v2987_v43 = vrot.slane %v5704_v15, %v5287_v23  ;;  %v3071_v15 = vrot.slane %v5719_v9, %v5314_v50 }
 0x414   : > { %v4043_v3 = vpop.eup %4042  ;;  %4062 = vpow2.f32 %v3434_v55  ;;  %v3437_v56 = vmul.f32 -1.442695, %v1598_v41  ;;  %v3031_v55 = vrot.slane %v5749_v58, %v5248_v26  ;;  %v2983_v41 = vsel %vm6059_vm3, %v2982_v40, %v5739_v39 }
 0x415   : > { %v5761_v61 = vpop.eup %4044  ;;  %v2095_v54 = vadd.f32 1.0, %v4043_v3  ;;  %4064 = vpow2.f32 %v3435_v18  ;;  %v1596_v2 = vpop.xlane.xlu0 %1595  ;;  %v3041_v3 = vrot.slane %v5757_v24, %v5263_v25 }
 0x416   : > { %v4047_v11 = vpop.eup %4046  ;;  %4066 = vrcp.f32 %v2091_v7  ;;  %v3436_v14 = vmul.f32 -1.442695, %v1596_v2  ;;  %v3085_v7 = vrot.slane %v5743_v22, %v5207_v10  ;;  %v3046_v10 = vrot.slane %v5761_v61, %v5255_v35 }
 0x417   : > { %v4049_v60 = vpop.eup %4048  ;;  %4068 = vrcp.f32 %v2095_v54  ;;  %v2104_v36 = vadd.f32 1.0, %v4047_v11  ;;  %v3027_v54 = vsel %vm2532_vm10, %v3026_v42, %v3022_v6 }
 0x418   : > { %v4051_v63 = vpop.eup %4050  ;;  %4070 = vpow2.f32 %v3437_v56  ;;  %v2105_v53 = vadd.f32 1.0, %v4049_v60  ;;  %v3090_v56 = vrot.slane %v5747_v57, %v5221_v44  ;;  %v3032_v2 = vsel %vm6060_vm2, %v3031_v55, %v3027_v54 }
 0x419   : > { %v5765_v4 = vpop.eup %4052  ;;  %v2092_v0 = vadd.f32 1.0, %v4051_v63  ;;  %4072 = vpow2.f32 %v3436_v14  ;;  %v3037_v39 = vsel %vm6061_vm0, %v3036_v38, %v3032_v2  ;;  %v3095_v60 = vrot.slane %v5751_v45, %v5216_v1 }
 0x41a   : > { %v4055_v8 = vpop.eup %4054  ;;  %4074 = vrcp.f32 %v2102_v13  ;;  %v3042_v63 = vsel %vm2553_vm13, %v3041_v3, %v3037_v39  ;;  %v3076_v38 = vrot.slane %v5735_v31, %v5305_v33 }
 0x41b   : > { %v4057_v47 = vpop.eup %4056  ;;  %4076 = vrcp.f32 %v2092_v0  ;;  %v3051_v24 = vrot.slane %v4055_v8, %v5274_v12  ;;  %v3047_v19 = vsel %vm6062_vm1, %v3046_v10, %v3042_v63  ;;  %v3105_v8 = vrot.slane %v5759_v51, %v5230_v29 }
 0x41c   : > { %v4059_v62 = vpop.eup %4058  ;;  %4078 = vrcp.f32 %v2103_v20  ;;  %v2106_v21 = vadd.f32 1.0, %v4057_v47  ;;  %v3100_v20 = vrot.slane %v5755_v49, %v5234_v34  ;;  %v3110_v29 = vrot.slane %v5765_v4, %v5248_v26 }
 0x41d   : > { %v4061_v28 = vpop.eup %4060  ;;  %4080 = vrcp.f32 %v2104_v36  ;;  %v3056_v13 = vrot.slane %v4059_v62, %v5269_v48  ;;  %v3052_v1 = vsel %vm2567_vm5, %v3051_v24, %v3047_v19 }
 0x41e   : > { %v4063_v59 = vpop.eup %4062  ;;  %4082 = vrcp.f32 %v2105_v53  ;;  %v2078_v17 = vadd.f32 1.0, %v4061_v28 }
 0x41f   : > { %v4065_v18 = vpop.eup %4064  ;;  %4084 = vrcp.f32 %v2106_v21  ;;  %v2107_v16 = vadd.f32 1.0, %v4063_v59  ;;  %v3057_v47 = vsel %vm2574_vm15, %v3056_v13, %v3052_v1 }
 0x420   : > { %v4067_v58 = vpop.eup %4066  ;;  %4086 = vrcp.f32 %v2078_v17  ;;  %v2108_v22 = vadd.f32 1.0, %v4065_v18 }
 0x421   : > { %v4069_v37 = vpop.eup %4068  ;;  %4088 = vrcp.f32 %v2107_v16  ;;  %v3061_v44 = vrot.slane %v4067_v58, %v5290_v52 }
 0x422   : > { %v4071_v11 = vpop.eup %4070  ;;  %v3081_v14 = vrot.slane %v4069_v37, %v5089_v32  ;;  %4090 = vrcp.f32 %v2108_v22 }
 0x423   : > { %v4073_v61 = vpop.eup %4072  ;;  %v2110_v57 = vadd.f32 1.0, %v4071_v11 }
 0x424   : > { %v4075_v30 = vpop.eup %4074  ;;  %v3086_v36 = vsel %vm2504_vm4, %v3085_v7, %v3081_v14  ;;  %v2109_v32 = vadd.f32 1.0, %v4073_v61  ;;  %vm6063_vm4 = vmmov %vm6059_vm3 }
 0x425   : > { %v4077_v0 = vpop.eup %4076  ;;  %v3091_v45 = vsel %vm2511_vm6, %v3090_v56, %v3086_v36  ;;  %4092 = vrcp.f32 %v2110_v57  ;;  %v3062_v42 = vsel %vm6063_vm4, %v3061_v44, %v3057_v47  ;;  %v3115_v28 = vrot.slane %v4075_v30, %v5240_v5  ;;  %vm6068_vm3 = vmmov %vm6062_vm1 }
 0x426   : > { %v4079_v53 = vpop.eup %4078  ;;  %v3096_v34 = vsel %vm2518_vm8, %v3095_v60, %v3091_v45  ;;  %v3066_v49 = vrot.slane %v4077_v0, %v5287_v23  ;;  %4094 = vrcp.f32 %v2109_v32  ;;  %vm6064_vm6 = vcmask 917312  }
 0x427   : > { %v4081_v62 = vpop.eup %4080  ;;  %v3101_v51 = vsel %vm2525_vm9, %v3100_v20, %v3096_v34  ;;  %vm3167_vm8 = vcmask 1046534   ;;  %v3120_v26 = vrot.slane %v4079_v53, %v5263_v25  ;;  %vm6066_vm9 = vmmov %vm6064_vm6  ;;  %v2992_v5 = vrot.slane %v5714_v27, %v5314_v50 }
 0x428   : > { %v4083_v21 = vpop.eup %4082  ;;  %v3106_v40 = vsel %vm2532_vm10, %v3105_v8, %v3101_v51  ;;  %v3067_v6 = vsel %vm6064_vm6, %v3066_v49, %v3062_v42  ;;  %v2988_v59 = vsel %vm6066_vm9, %v2987_v43, %v2983_v41  ;;  %v3125_v17 = vrot.slane %v4081_v62, %v5255_v35  ;;  %vm6067_vm10 = vmmov %vm6061_vm0 }
 0x429   : > { %v4085_v55 = vpop.eup %4084  ;;  %v3111_v4 = vsel %vm6065_vm11, %v3110_v29, %v3106_v40  ;;  %v3130_v25 = vrot.slane %v4083_v21, %v5274_v12  ;;  %v3072_v41 = vsel %vm2595_vm14, %v3071_v15, %v3067_v6  ;;  %v2993_v54 = vsel %vm2595_vm14, %v2992_v5, %v2988_v59 }
 0x42a   : > { %v4087_v7 = vpop.eup %4086  ;;  %v3116_v18 = vsel %vm6067_vm10, %v3115_v28, %v3111_v4  ;;  %v3135_v35 = vrot.slane %v4085_v55, %v5269_v48  ;;  %v3077_v37 = vsel %vm2602_vm7, %v3076_v38, %v3072_v41 }
 0x42b   : > { %v4089_v3 = vpop.eup %4088  ;;  %v3121_v9 = vsel %vm2553_vm13, %v3120_v26, %v3116_v18  ;;  %v2997_v16 = vrot.slane %v4087_v7, %v5305_v33  ;;  %vm6069_vm13 = vmmov %vm6063_vm4 }
 0x42c   : > { %v4091_v27 = vpop.eup %4090  ;;  %v3126_v58 = vsel %vm6068_vm3, %v3125_v17, %v3121_v9  ;;  %v3140_v31 = vrot.slane %v4089_v3, %v5290_v52 }
 0x42d   : > { %v3131_v12 = vsel %vm2567_vm5, %v3130_v25, %v3126_v58  ;;  %v2998_v10 = vsel %vm2602_vm7, %v2997_v16, %v2993_v54  ;;  %v3145_v22 = vrot.slane %v4091_v27, %v5287_v23  ;;  %vm6070_vm5 = vmmov %vm6064_vm6 }
 0x42e   : > { %v3136_v56 = vsel %vm2574_vm15, %v3135_v35, %v3131_v12  ;;  %v3166_v2 = vsel %vm3165_vm12, %v2998_v10, %v5684_v46  ;;  %vm3169_vm15 = vcmask 1047559  }
 0x42f   : > { %v4093_v24 = vpop.eup %4092  ;;  %v3141_v48 = vsel %vm6069_vm13, %v3140_v31, %v3136_v56  ;;  %v3168_v52 = vsel %vm3167_vm8, %v3077_v37, %v3166_v2 }
 0x430   : > { %v4095_v11 = vpop.eup %4094  ;;  %v3155_v39 = vrot.slane %v4093_v24, %v5305_v33  ;;  %v3146_v23 = vsel %vm6070_vm5, %v3145_v22, %v3141_v48 }
 0x431   : > { %v3150_v13 = vrot.slane %v4095_v11, %v5314_v50 }
 0x433   : > { %v3151_v46 = vsel %vm2595_vm14, %v3150_v13, %v3146_v23 }
 0x434   : > { %v3156_v14 = vsel %vm2602_vm7, %v3155_v39, %v3151_v46 }
 0x435   : > { %v3170_v33 = vsel %vm3169_vm15, %v3156_v14, %v3168_v52 }
 0x436   : > { %3172 = vst [vmem:[%s231_s10] sm:$0xff] %v3170_v33 }
 0x437   : > { %4165 = shalt.err (!%p4162_p11)
}
 0x438   : > { %s4166_s20 = scalar_lea.hbm %s5863_s13, 128  ;;  %s4170_s28 = scalar_lea.hbm %s5911_s4, 256 }
 0x439   : > { %p4167_p13 = scmp.ne.s32.totalorder %s5863_s13, %s4166_s20  ;;  %p4171_p6 = scmp.lt.u32.totalorder %s5863_s13, %s5911_s4 }
 0x43a   : > { %p4172_p9 = scmp.lt.u32.totalorder %s4170_s28, %s4166_s20  ;;  %p4174_p12 = scmp.lt.u32.totalorder %s4166_s20, %s5863_s13 }
 0x43b   : > { %p4168_p5 = pnand %p4167_p13, %p6071_p1 }
 0x43c   : > { %p4173_p10 = por %p4172_p9, %p4171_p6 }
 0x43d   : > { %p4169_p0 = pneg %p4168_p5 }
 0x43e   : > { %p4175_p2 = por %p4174_p12, %p4173_p10 }
 0x440   : > { %p4176_p3 = pnand %p4175_p2, %p4169_p0 }
 0x442   : > { %4179 = shalt.err (!%p4176_p3)
}
 0x443   : > { %3508 = dma.vmem_to_hbm [thread:$0]  (%p6071_p1), %s5865_s11, 128, %s5863_s13, %s3174_s19  }
 0x444 PF: > { %p3525_p4 = scmp.ge.s32.totalorder %s4222_s18, 2  ;;  %s3199_s8 = sand.u32 1, %s4210_s15  }
 0x445   : > { %p6072_p7 = scmp.ne.s32.totalorder %s5939_s26, 0  ;;  %s3200_s9 = scalar_lea.sflag [#allocation4], %s3199_s8 }
 0x447   : > { %p3518_p8 = pnand %p3525_p4, %p6072_p7 }
 0x449   : > { %4205 = dma.done.wait (!%p3518_p8), %s3200_s9, 128  }
 0x44a   : > { %4207 = vsyncadd (!%p3518_p8), %s3200_s9, 4294967168  ;;  %p16_p11 = scmp.ge.s32.totalorder %s4284_s21, 4   ;;  %s6073_s15 = smov %s4214_s16 }
 0x44b   : > { %s6074_s16 = smov %s4218_s17  ;;  %s6075_s17 = smov %s4295_s24 }
 0x44c   : > { %s6076_s18 = smov %s4284_s21  ;;  %18 = sbr.rel (!%p16_p11) target bundleno = 5 (0x5), region = 83 }
 0x453   :  { %3205 = vsyncpa [#allocation3], 1 }
 0x454   :  { %3207 = vsyncpa [#allocation3 + $0x1], 1 }
 0x455   :  { %3208 = vsyncpa [#allocation6], 1 }
 0x456   :  { %3209 = vsyncpa [#allocation4], 1 }
 0x457   :  { %3211 = vsyncpa [#allocation4 + $0x1], 1 }

</bundles_post_ra>
